<compile_context>
chip_gen: v6e
topology: v6e:2x2x1
jax: 0.10.0
libtpu: 0.0.40
codegen_flags: <defaults>
</compile_context>

<pallas_src>
import functools
import math

import jax
import jax.numpy as jnp
from jax.experimental import pallas as pl
from jax.experimental.pallas import tpu as pltpu


def _round_up(n, m):
    return ((n + m - 1) // m) * m


def _pad_to(a, shape):
    """Zero-pad array `a` up to `shape` (no dim may shrink)."""
    pads = [(0, t - s) for s, t in zip(a.shape, shape)]
    if all(p == (0, 0) for p in pads):
        return a
    return jnp.pad(a, pads)


def encoder_kernel(
    x_ref,
    wqkv_ref, bqkv_ref,
    wo_ref, bo_ref,
    g1_ref, be1_ref,
    w1_ref, bf1_ref, w2_ref, bf2_ref,
    g2_ref, be2_ref,
    out_ref,
    *, T, H, Qd, Vd, D_real,
):
    M, Dp = x_ref.shape            # M = SB * T flattened rows in this block
    SB = M // T
    HQ = H * Qd
    HV = H * Vd

    xf = x_ref[...].astype(jnp.float32)       # (M, Dp) f32 for LN / residuals
    xb = xf.astype(jnp.bfloat16)               # bf16 operands for the MXU

    # lane mask so LayerNorm statistics ignore the zero-padded lanes >= D_real
    lane = jax.lax.broadcasted_iota(jnp.int32, (1, Dp), 1)
    dmask = (lane < D_real).astype(jnp.float32)
    inv_d = 1.0 / float(D_real)

    def layernorm(v, gamma, beta, eps=1e-5):
        mu = jnp.sum(v, axis=-1, keepdims=True) * inv_d
        vc = (v - mu) * dmask                              # padded lanes -> 0
        var = jnp.sum(vc * vc, axis=-1, keepdims=True) * inv_d
        # padded gamma/beta are zero, so padded output lanes stay exactly 0
        return vc * jax.lax.rsqrt(var + eps) * gamma + beta

    # ---- fused QKV projection: one MXU push over all SB*T rows ----
    qkv = jnp.dot(xb, wqkv_ref[...],
                  preferred_element_type=jnp.float32) + bqkv_ref[...]
    qp = qkv[:, :HQ] * (1.0 / math.sqrt(Qd))   # scale q once (M*HQ muls)
    kp = qkv[:, HQ:2 * HQ]
    vp = qkv[:, 2 * HQ:2 * HQ + HV]

    # split rows back into (SB, T, .) for per-sequence attention
    q3 = qp.reshape(SB, T, HQ).astype(jnp.bfloat16)
    k3 = kp.reshape(SB, T, HQ).astype(jnp.bfloat16)
    v3 = vp.reshape(SB, T, HV).astype(jnp.bfloat16)

    # ---- multi-head attention, batched over the SB sequences per head ----
    heads = []
    for h in range(H):                         # H small & static -> unrolled
        qh = q3[:, :, h * Qd:(h + 1) * Qd]     # (SB, T, Qd)
        kh = k3[:, :, h * Qd:(h + 1) * Qd]     # (SB, T, Qd)
        vh = v3[:, :, h * Vd:(h + 1) * Vd]     # (SB, T, Vd)

        s = jnp.einsum("bik,bjk->bij", qh, kh,
                       preferred_element_type=jnp.float32)     # (SB, T, T)
        s = s - jnp.max(s, axis=-1, keepdims=True)
        p = jnp.exp(s)
        p = p * pl.reciprocal(jnp.sum(p, axis=-1, keepdims=True), approx=True)

        oh = jnp.einsum("bij,bjv->biv", p.astype(jnp.bfloat16), vh,
                        preferred_element_type=jnp.float32)    # (SB, T, Vd)
        heads.append(oh)

    # concat heads, then ONE bf16 output-projection matmul (K = H*Vd)
    o_cat = jnp.concatenate(heads, axis=-1).reshape(M, HV).astype(jnp.bfloat16)
    attn = jnp.dot(o_cat, wo_ref[...],
                   preferred_element_type=jnp.float32) + bo_ref[...]

    # residual + layernorm1 (dropout is identity in eval mode)
    x1 = layernorm(xf + attn, g1_ref[...], be1_ref[...])

    # ---- position-wise feed-forward ----
    h1 = jnp.dot(x1.astype(jnp.bfloat16), w1_ref[...],
                 preferred_element_type=jnp.float32) + bf1_ref[...]
    h1 = jnp.maximum(h1, 0.0)
    ff = jnp.dot(h1.astype(jnp.bfloat16), w2_ref[...],
                 preferred_element_type=jnp.float32) + bf2_ref[...]

    # residual + layernorm2
    x2 = layernorm(x1 + ff, g2_ref[...], be2_ref[...])

    out_ref[...] = x2.astype(out_ref.dtype)


def _pick_seq_block(B, T, row_cap=2048):
    """Whole sequences per grid step.

    Prefer the largest divisor of B that keeps rows per step <= row_cap and
    still leaves >= 2 grid steps (so the "parallel" axis can shard across
    v7x's two TensorCores; no effect on the single-TC v5e/v6e).
    """
    candidates = [c for c in range(1, B + 1)
                  if B % c == 0 and c * T <= row_cap]
    if not candidates:
        return B
    multi = [c for c in candidates if B // c >= 2]
    return max(multi) if multi else max(candidates)


def encoder_forward(x, params, *, H, Qd, Vd, seq_block=None):
    B, T, D = x.shape
    Dp = _round_up(D, 128)                 # lane-dense residual / output dim
    D_FF = params["w1"].shape[1]
    D_FFp = _round_up(D_FF, 128)           # lane-dense FFN hidden dim

    SB = _pick_seq_block(B, T) if seq_block is None else seq_block
    assert B % SB == 0
    if (SB * T) % 8 != 0:                  # keep the x/out blocks sublane-tiled
        SB = B                             # single full-array block is always legal
    n_blocks = B // SB
    M_blk = SB * T

    bf16 = jnp.bfloat16
    f32 = jnp.float32

    # fused QKV weight/bias (wrapper-side, free)
    wqkv = jnp.concatenate([params["wq"], params["wk"], params["wv"]], axis=1)
    bqkv = jnp.concatenate([params["bq"], params["bk"], params["bv"]], axis=1)
    HQ, HV = H * Qd, H * Vd

    weights = [
        _pad_to(wqkv, (Dp, 2 * HQ + HV)).astype(bf16),          # wqkv
        bqkv.astype(f32),                                        # bqkv
        _pad_to(params["wo"], (HV, Dp)).astype(bf16),            # wo
        _pad_to(params["bo"], (1, Dp)).astype(f32),              # bo
        _pad_to(params["g1"], (1, Dp)).astype(f32),              # gamma1 (pad=0)
        _pad_to(params["be1"], (1, Dp)).astype(f32),             # beta1  (pad=0)
        _pad_to(params["w1"], (Dp, D_FFp)).astype(bf16),         # w1
        _pad_to(params["bf1"], (1, D_FFp)).astype(f32),          # b_ff1
        _pad_to(params["w2"], (D_FFp, Dp)).astype(bf16),         # w2
        _pad_to(params["bf2"], (1, Dp)).astype(f32),             # b_ff2
        _pad_to(params["g2"], (1, Dp)).astype(f32),              # gamma2
        _pad_to(params["be2"], (1, Dp)).astype(f32),             # beta2
    ]

    # fold batch into the row (MXU M) dimension and lane-pad D outside kernel
    xf = _pad_to(x.reshape(B * T, D), (B * T, Dp))

    def full_spec(arr):
        nd = arr.ndim
        return pl.BlockSpec(arr.shape, lambda s, _nd=nd: (0,) * _nd)

    kernel = functools.partial(encoder_kernel, T=T, H=H, Qd=Qd, Vd=Vd, D_real=D)

    out_flat = pl.pallas_call(
        kernel,
        out_shape=jax.ShapeDtypeStruct((B * T, Dp), x.dtype),
        grid_spec=pltpu.PrefetchScalarGridSpec(
            num_scalar_prefetch=0,
            grid=(n_blocks,),
            in_specs=[pl.BlockSpec((M_blk, Dp), lambda s: (s, 0))]
                     + [full_spec(w) for w in weights],
            out_specs=pl.BlockSpec((M_blk, Dp), lambda s: (s, 0)),
        ),
        compiler_params=pltpu.CompilerParams(
            dimension_semantics=("parallel",),   # row-block axis -> both TCs
            # 48 MiB: within v7x's 64 MiB physical VMEM, generous for v5e/v6e
            vmem_limit_bytes=48 * 1024 * 1024,
        ),
    )(xf, *weights)

    return out_flat.reshape(B, T, Dp)[:, :, :D]


def init_params(key, D, Qd, Vd, H, D_FF):
    ks = jax.random.split(key, 8)

    def lin(k, fan_in, fan_out):
        lim = 1.0 / math.sqrt(fan_in)
        kw, kb = jax.random.split(k)
        w = jax.random.uniform(kw, (fan_in, fan_out), jnp.float32, -lim, lim)
        b = jax.random.uniform(kb, (1, fan_out), jnp.float32, -lim, lim)
        return w, b

    wq, bq = lin(ks[0], D, Qd * H)
    wk, bk = lin(ks[1], D, Qd * H)
    wv, bv = lin(ks[2], D, Vd * H)
    wo, bo = lin(ks[3], Vd * H, D)
    w1, bf1 = lin(ks[4], D, D_FF)
    w2, bf2 = lin(ks[5], D_FF, D)
    return {
        "wq": wq, "bq": bq, "wk": wk, "bk": bk, "wv": wv, "bv": bv,
        "wo": wo, "bo": bo,
        "g1": jnp.ones((1, D), jnp.float32), "be1": jnp.zeros((1, D), jnp.float32),
        "w1": w1, "bf1": bf1, "w2": w2, "bf2": bf2,
        "g2": jnp.ones((1, D), jnp.float32), "be2": jnp.zeros((1, D), jnp.float32),
    }


def encoder_reference(x, p, *, H, Qd, Vd):
    # pure-JAX f32 reference for a sanity check
    qp = x @ p["wq"] + p["bq"][0]
    kp = x @ p["wk"] + p["bk"][0]
    vp = x @ p["wv"] + p["bv"][0]
    heads = []
    for h in range(H):
        qh, kh = qp[..., h * Qd:(h + 1) * Qd], kp[..., h * Qd:(h + 1) * Qd]
        vh = vp[..., h * Vd:(h + 1) * Vd]
        s = jnp.einsum("btq,bsq->bts", qh, kh) / math.sqrt(Qd)
        heads.append(jnp.einsum("bts,bsv->btv", jax.nn.softmax(s, axis=-1), vh))
    attn = jnp.concatenate(heads, axis=-1) @ p["wo"] + p["bo"][0]

    def ln(v, g, b):
        mu = jnp.mean(v, -1, keepdims=True)
        var = jnp.mean((v - mu) ** 2, -1, keepdims=True)
        return (v - mu) * jax.lax.rsqrt(var + 1e-5) * g + b

    x1 = ln(x + attn, p["g1"][0], p["be1"][0])
    ff = jnp.maximum(x1 @ p["w1"] + p["bf1"][0], 0.0) @ p["w2"] + p["bf2"][0]
    return ln(x1 + ff, p["g2"][0], p["be2"][0])


if __name__ == "__main__":
    B, T, D_embed = 2, 8, 32
    Qd, Vd, H = 8, 8, 4
    D_FF = 64

    key = jax.random.PRNGKey(0)
    kx, kp = jax.random.split(key)
    x = jax.random.normal(kx, (B, T, D_embed), jnp.float32)
    params = init_params(kp, D_embed, Qd, Vd, H, D_FF)

    out = encoder_forward(x, params, H=H, Qd=Qd, Vd=Vd)
    out = jax.block_until_ready(out)

    ref = encoder_reference(x, params, H=H, Qd=Qd, Vd=Vd)
    assert out.shape == (B, T, D_embed)
    # bf16 MXU operands + approx reciprocal -> looser tolerance than pure f32
    assert jnp.allclose(out, ref, atol=5e-2, rtol=5e-2), "mismatch vs JAX reference"

    print("KERNEL_OK")
</pallas_src>

<mosaic_0001>
module attributes {stable_mosaic.version = 11 : i64} {
  func.func @encoder_kernel(%arg0: i32, %arg1: memref<8x128xf32, #tpu.memory_space<vmem>>, %arg2: memref<128x96xbf16, #tpu.memory_space<vmem>>, %arg3: memref<1x96xf32, #tpu.memory_space<vmem>>, %arg4: memref<32x128xbf16, #tpu.memory_space<vmem>>, %arg5: memref<1x128xf32, #tpu.memory_space<vmem>>, %arg6: memref<1x128xf32, #tpu.memory_space<vmem>>, %arg7: memref<1x128xf32, #tpu.memory_space<vmem>>, %arg8: memref<128x128xbf16, #tpu.memory_space<vmem>>, %arg9: memref<1x128xf32, #tpu.memory_space<vmem>>, %arg10: memref<128x128xbf16, #tpu.memory_space<vmem>>, %arg11: memref<1x128xf32, #tpu.memory_space<vmem>>, %arg12: memref<1x128xf32, #tpu.memory_space<vmem>>, %arg13: memref<1x128xf32, #tpu.memory_space<vmem>>, %arg14: memref<8x128xf32, #tpu.memory_space<vmem>>) attributes {dimension_semantics = [#tpu.dimension_semantics<parallel>], iteration_bounds = array<i64: 2>, scalar_prefetch = 0 : i64, scratch_operands = 0 : i64, tpu.core_type = #tpu.core_type<tc>, window_params = [{transform_indices = @transform_0, window_bounds = array<i64: 8, 128>}, {pipeline_mode = #tpu.pipeline_mode<synchronous>, transform_indices = @transform_1, window_bounds = array<i64: 128, 96>}, {pipeline_mode = #tpu.pipeline_mode<synchronous>, transform_indices = @transform_2, window_bounds = array<i64: 1, 96>}, {pipeline_mode = #tpu.pipeline_mode<synchronous>, transform_indices = @transform_3, window_bounds = array<i64: 32, 128>}, {pipeline_mode = #tpu.pipeline_mode<synchronous>, transform_indices = @transform_4, window_bounds = array<i64: 1, 128>}, {pipeline_mode = #tpu.pipeline_mode<synchronous>, transform_indices = @transform_5, window_bounds = array<i64: 1, 128>}, {pipeline_mode = #tpu.pipeline_mode<synchronous>, transform_indices = @transform_6, window_bounds = array<i64: 1, 128>}, {pipeline_mode = #tpu.pipeline_mode<synchronous>, transform_indices = @transform_7, window_bounds = array<i64: 128, 128>}, {pipeline_mode = #tpu.pipeline_mode<synchronous>, transform_indices = @transform_8, window_bounds = array<i64: 1, 128>}, {pipeline_mode = #tpu.pipeline_mode<synchronous>, transform_indices = @transform_9, window_bounds = array<i64: 128, 128>}, {pipeline_mode = #tpu.pipeline_mode<synchronous>, transform_indices = @transform_10, window_bounds = array<i64: 1, 128>}, {pipeline_mode = #tpu.pipeline_mode<synchronous>, transform_indices = @transform_11, window_bounds = array<i64: 1, 128>}, {pipeline_mode = #tpu.pipeline_mode<synchronous>, transform_indices = @transform_12, window_bounds = array<i64: 1, 128>}, {transform_indices = @transform_13, window_bounds = array<i64: 8, 128>}]} {
    %c0 = arith.constant 0 : index
    %c0_0 = arith.constant 0 : index
    %0 = vector.load %arg1[%c0, %c0_0] : memref<8x128xf32, #tpu.memory_space<vmem>>, vector<8x128xf32>
    %1 = arith.truncf %0 : vector<8x128xf32> to vector<8x128xbf16>
    %2 = tpu.iota {dimensions = array<i32: 1>} : vector<1x128xi32>
    %c32_i32 = arith.constant 32 : i32
    %3 = vector.broadcast %c32_i32 : i32 to vector<1x128xi32>
    %4 = arith.cmpi slt, %2, %3 : vector<1x128xi32>
    %5 = arith.extui %4 : vector<1x128xi1> to vector<1x128xi32>
    %6 = arith.sitofp %5 : vector<1x128xi32> to vector<1x128xf32>
    %c0_1 = arith.constant 0 : index
    %c0_2 = arith.constant 0 : index
    %7 = vector.load %arg2[%c0_1, %c0_2] : memref<128x96xbf16, #tpu.memory_space<vmem>>, vector<128x96xbf16>
    %cst = arith.constant dense<0.000000e+00> : vector<8x96xf32>
    %8 = tpu.matmul %1, %7, %cst {dimension_numbers = #tpu.dot_dimension_numbers<[1], [0], [0], [1], [0, 0, 1, 1], [], []>} : vector<8x128xbf16>, vector<128x96xbf16>, vector<8x96xf32> -> vector<8x96xf32>
    %c0_3 = arith.constant 0 : index
    %c0_4 = arith.constant 0 : index
    %9 = vector.load %arg3[%c0_3, %c0_4] : memref<1x96xf32, #tpu.memory_space<vmem>>, vector<1x96xf32>
    %10 = vector.broadcast %9 : vector<1x96xf32> to vector<8x96xf32>
    %11 = arith.addf %8, %10 : vector<8x96xf32>
    %12 = vector.extract_strided_slice %11 {offsets = [0, 0], sizes = [8, 32], strides = [1, 1]} : vector<8x96xf32> to vector<8x32xf32>
    %cst_5 = arith.constant 0.353553385 : f32
    %13 = vector.broadcast %cst_5 : f32 to vector<8x32xf32>
    %14 = arith.mulf %12, %13 : vector<8x32xf32>
    %15 = vector.extract_strided_slice %11 {offsets = [0, 32], sizes = [8, 32], strides = [1, 1]} : vector<8x96xf32> to vector<8x32xf32>
    %16 = vector.extract_strided_slice %11 {offsets = [0, 64], sizes = [8, 32], strides = [1, 1]} : vector<8x96xf32> to vector<8x32xf32>
    %17 = vector.shape_cast %14 : vector<8x32xf32> to vector<1x8x32xf32>
    %18 = arith.truncf %17 : vector<1x8x32xf32> to vector<1x8x32xbf16>
    %19 = vector.shape_cast %15 : vector<8x32xf32> to vector<1x8x32xf32>
    %20 = arith.truncf %19 : vector<1x8x32xf32> to vector<1x8x32xbf16>
    %21 = vector.shape_cast %16 : vector<8x32xf32> to vector<1x8x32xf32>
    %22 = arith.truncf %21 : vector<1x8x32xf32> to vector<1x8x32xbf16>
    %23 = vector.extract_strided_slice %18 {offsets = [0, 0, 0], sizes = [1, 8, 8], strides = [1, 1, 1]} : vector<1x8x32xbf16> to vector<1x8x8xbf16>
    %24 = vector.extract_strided_slice %20 {offsets = [0, 0, 0], sizes = [1, 8, 8], strides = [1, 1, 1]} : vector<1x8x32xbf16> to vector<1x8x8xbf16>
    %25 = vector.extract_strided_slice %22 {offsets = [0, 0, 0], sizes = [1, 8, 8], strides = [1, 1, 1]} : vector<1x8x32xbf16> to vector<1x8x8xbf16>
    "tpu.trace_start"() <{level = 10 : i32, message = "bik,bjk->bij"}> : () -> ()
    %cst_6 = arith.constant dense<0.000000e+00> : vector<1x8x8xf32>
    %26 = tpu.matmul %23, %24, %cst_6 {dimension_numbers = #tpu.dot_dimension_numbers<[2], [2], [1], [1], [0, 0, 0, 1, 1, 1], [0], [0]>} : vector<1x8x8xbf16>, vector<1x8x8xbf16>, vector<1x8x8xf32> -> vector<1x8x8xf32>
    "tpu.trace_stop"() : () -> ()
    %cst_7 = arith.constant dense<0xFF800000> : vector<1x8xf32>
    %27 = vector.multi_reduction <maximumf>, %26, %cst_7 [2] : vector<1x8x8xf32> to vector<1x8xf32>
    %28 = vector.shape_cast %27 : vector<1x8xf32> to vector<1x8x1xf32>
    %29 = vector.broadcast %28 : vector<1x8x1xf32> to vector<1x8x8xf32>
    %30 = arith.subf %26, %29 : vector<1x8x8xf32>
    %31 = math.exp %30 : vector<1x8x8xf32>
    %cst_8 = arith.constant dense<0.000000e+00> : vector<1x8xf32>
    %32 = vector.multi_reduction <add>, %31, %cst_8 [2] : vector<1x8x8xf32> to vector<1x8xf32>
    %33 = vector.shape_cast %32 : vector<1x8xf32> to vector<1x8x1xf32>
    %34 = tpu.reciprocal %33 {approx = true} : vector<1x8x1xf32> -> vector<1x8x1xf32>
    %35 = vector.broadcast %34 : vector<1x8x1xf32> to vector<1x8x8xf32>
    %36 = arith.mulf %31, %35 : vector<1x8x8xf32>
    %37 = arith.truncf %36 : vector<1x8x8xf32> to vector<1x8x8xbf16>
    "tpu.trace_start"() <{level = 10 : i32, message = "bij,bjv->biv"}> : () -> ()
    %cst_9 = arith.constant dense<0.000000e+00> : vector<1x8x8xf32>
    %38 = tpu.matmul %37, %25, %cst_9 {dimension_numbers = #tpu.dot_dimension_numbers<[2], [1], [1], [2], [0, 0, 0, 1, 1, 2], [0], [0]>} : vector<1x8x8xbf16>, vector<1x8x8xbf16>, vector<1x8x8xf32> -> vector<1x8x8xf32>
    "tpu.trace_stop"() : () -> ()
    %39 = vector.extract_strided_slice %18 {offsets = [0, 0, 8], sizes = [1, 8, 8], strides = [1, 1, 1]} : vector<1x8x32xbf16> to vector<1x8x8xbf16>
    %40 = vector.extract_strided_slice %20 {offsets = [0, 0, 8], sizes = [1, 8, 8], strides = [1, 1, 1]} : vector<1x8x32xbf16> to vector<1x8x8xbf16>
    %41 = vector.extract_strided_slice %22 {offsets = [0, 0, 8], sizes = [1, 8, 8], strides = [1, 1, 1]} : vector<1x8x32xbf16> to vector<1x8x8xbf16>
    "tpu.trace_start"() <{level = 10 : i32, message = "bik,bjk->bij"}> : () -> ()
    %cst_10 = arith.constant dense<0.000000e+00> : vector<1x8x8xf32>
    %42 = tpu.matmul %39, %40, %cst_10 {dimension_numbers = #tpu.dot_dimension_numbers<[2], [2], [1], [1], [0, 0, 0, 1, 1, 1], [0], [0]>} : vector<1x8x8xbf16>, vector<1x8x8xbf16>, vector<1x8x8xf32> -> vector<1x8x8xf32>
    "tpu.trace_stop"() : () -> ()
    %cst_11 = arith.constant dense<0xFF800000> : vector<1x8xf32>
    %43 = vector.multi_reduction <maximumf>, %42, %cst_11 [2] : vector<1x8x8xf32> to vector<1x8xf32>
    %44 = vector.shape_cast %43 : vector<1x8xf32> to vector<1x8x1xf32>
    %45 = vector.broadcast %44 : vector<1x8x1xf32> to vector<1x8x8xf32>
    %46 = arith.subf %42, %45 : vector<1x8x8xf32>
    %47 = math.exp %46 : vector<1x8x8xf32>
    %cst_12 = arith.constant dense<0.000000e+00> : vector<1x8xf32>
    %48 = vector.multi_reduction <add>, %47, %cst_12 [2] : vector<1x8x8xf32> to vector<1x8xf32>
    %49 = vector.shape_cast %48 : vector<1x8xf32> to vector<1x8x1xf32>
    %50 = tpu.reciprocal %49 {approx = true} : vector<1x8x1xf32> -> vector<1x8x1xf32>
    %51 = vector.broadcast %50 : vector<1x8x1xf32> to vector<1x8x8xf32>
    %52 = arith.mulf %47, %51 : vector<1x8x8xf32>
    %53 = arith.truncf %52 : vector<1x8x8xf32> to vector<1x8x8xbf16>
    "tpu.trace_start"() <{level = 10 : i32, message = "bij,bjv->biv"}> : () -> ()
    %cst_13 = arith.constant dense<0.000000e+00> : vector<1x8x8xf32>
    %54 = tpu.matmul %53, %41, %cst_13 {dimension_numbers = #tpu.dot_dimension_numbers<[2], [1], [1], [2], [0, 0, 0, 1, 1, 2], [0], [0]>} : vector<1x8x8xbf16>, vector<1x8x8xbf16>, vector<1x8x8xf32> -> vector<1x8x8xf32>
    "tpu.trace_stop"() : () -> ()
    %55 = vector.extract_strided_slice %18 {offsets = [0, 0, 16], sizes = [1, 8, 8], strides = [1, 1, 1]} : vector<1x8x32xbf16> to vector<1x8x8xbf16>
    %56 = vector.extract_strided_slice %20 {offsets = [0, 0, 16], sizes = [1, 8, 8], strides = [1, 1, 1]} : vector<1x8x32xbf16> to vector<1x8x8xbf16>
    %57 = vector.extract_strided_slice %22 {offsets = [0, 0, 16], sizes = [1, 8, 8], strides = [1, 1, 1]} : vector<1x8x32xbf16> to vector<1x8x8xbf16>
    "tpu.trace_start"() <{level = 10 : i32, message = "bik,bjk->bij"}> : () -> ()
    %cst_14 = arith.constant dense<0.000000e+00> : vector<1x8x8xf32>
    %58 = tpu.matmul %55, %56, %cst_14 {dimension_numbers = #tpu.dot_dimension_numbers<[2], [2], [1], [1], [0, 0, 0, 1, 1, 1], [0], [0]>} : vector<1x8x8xbf16>, vector<1x8x8xbf16>, vector<1x8x8xf32> -> vector<1x8x8xf32>
    "tpu.trace_stop"() : () -> ()
    %cst_15 = arith.constant dense<0xFF800000> : vector<1x8xf32>
    %59 = vector.multi_reduction <maximumf>, %58, %cst_15 [2] : vector<1x8x8xf32> to vector<1x8xf32>
    %60 = vector.shape_cast %59 : vector<1x8xf32> to vector<1x8x1xf32>
    %61 = vector.broadcast %60 : vector<1x8x1xf32> to vector<1x8x8xf32>
    %62 = arith.subf %58, %61 : vector<1x8x8xf32>
    %63 = math.exp %62 : vector<1x8x8xf32>
    %cst_16 = arith.constant dense<0.000000e+00> : vector<1x8xf32>
    %64 = vector.multi_reduction <add>, %63, %cst_16 [2] : vector<1x8x8xf32> to vector<1x8xf32>
    %65 = vector.shape_cast %64 : vector<1x8xf32> to vector<1x8x1xf32>
    %66 = tpu.reciprocal %65 {approx = true} : vector<1x8x1xf32> -> vector<1x8x1xf32>
    %67 = vector.broadcast %66 : vector<1x8x1xf32> to vector<1x8x8xf32>
    %68 = arith.mulf %63, %67 : vector<1x8x8xf32>
    %69 = arith.truncf %68 : vector<1x8x8xf32> to vector<1x8x8xbf16>
    "tpu.trace_start"() <{level = 10 : i32, message = "bij,bjv->biv"}> : () -> ()
    %cst_17 = arith.constant dense<0.000000e+00> : vector<1x8x8xf32>
    %70 = tpu.matmul %69, %57, %cst_17 {dimension_numbers = #tpu.dot_dimension_numbers<[2], [1], [1], [2], [0, 0, 0, 1, 1, 2], [0], [0]>} : vector<1x8x8xbf16>, vector<1x8x8xbf16>, vector<1x8x8xf32> -> vector<1x8x8xf32>
    "tpu.trace_stop"() : () -> ()
    %71 = vector.extract_strided_slice %18 {offsets = [0, 0, 24], sizes = [1, 8, 8], strides = [1, 1, 1]} : vector<1x8x32xbf16> to vector<1x8x8xbf16>
    %72 = vector.extract_strided_slice %20 {offsets = [0, 0, 24], sizes = [1, 8, 8], strides = [1, 1, 1]} : vector<1x8x32xbf16> to vector<1x8x8xbf16>
    %73 = vector.extract_strided_slice %22 {offsets = [0, 0, 24], sizes = [1, 8, 8], strides = [1, 1, 1]} : vector<1x8x32xbf16> to vector<1x8x8xbf16>
    "tpu.trace_start"() <{level = 10 : i32, message = "bik,bjk->bij"}> : () -> ()
    %cst_18 = arith.constant dense<0.000000e+00> : vector<1x8x8xf32>
    %74 = tpu.matmul %71, %72, %cst_18 {dimension_numbers = #tpu.dot_dimension_numbers<[2], [2], [1], [1], [0, 0, 0, 1, 1, 1], [0], [0]>} : vector<1x8x8xbf16>, vector<1x8x8xbf16>, vector<1x8x8xf32> -> vector<1x8x8xf32>
    "tpu.trace_stop"() : () -> ()
    %cst_19 = arith.constant dense<0xFF800000> : vector<1x8xf32>
    %75 = vector.multi_reduction <maximumf>, %74, %cst_19 [2] : vector<1x8x8xf32> to vector<1x8xf32>
    %76 = vector.shape_cast %75 : vector<1x8xf32> to vector<1x8x1xf32>
    %77 = vector.broadcast %76 : vector<1x8x1xf32> to vector<1x8x8xf32>
    %78 = arith.subf %74, %77 : vector<1x8x8xf32>
    %79 = math.exp %78 : vector<1x8x8xf32>
    %cst_20 = arith.constant dense<0.000000e+00> : vector<1x8xf32>
    %80 = vector.multi_reduction <add>, %79, %cst_20 [2] : vector<1x8x8xf32> to vector<1x8xf32>
    %81 = vector.shape_cast %80 : vector<1x8xf32> to vector<1x8x1xf32>
    %82 = tpu.reciprocal %81 {approx = true} : vector<1x8x1xf32> -> vector<1x8x1xf32>
    %83 = vector.broadcast %82 : vector<1x8x1xf32> to vector<1x8x8xf32>
    %84 = arith.mulf %79, %83 : vector<1x8x8xf32>
    %85 = arith.truncf %84 : vector<1x8x8xf32> to vector<1x8x8xbf16>
    "tpu.trace_start"() <{level = 10 : i32, message = "bij,bjv->biv"}> : () -> ()
    %cst_21 = arith.constant dense<0.000000e+00> : vector<1x8x8xf32>
    %86 = tpu.matmul %85, %73, %cst_21 {dimension_numbers = #tpu.dot_dimension_numbers<[2], [1], [1], [2], [0, 0, 0, 1, 1, 2], [0], [0]>} : vector<1x8x8xbf16>, vector<1x8x8xbf16>, vector<1x8x8xf32> -> vector<1x8x8xf32>
    "tpu.trace_stop"() : () -> ()
    %87 = tpu.concatenate %38, %54, %70, %86 in 2 : vector<1x8x8xf32>, vector<1x8x8xf32>, vector<1x8x8xf32>, vector<1x8x8xf32> -> vector<1x8x32xf32>
    %88 = vector.shape_cast %87 : vector<1x8x32xf32> to vector<8x32xf32>
    %89 = arith.truncf %88 : vector<8x32xf32> to vector<8x32xbf16>
    %c0_22 = arith.constant 0 : index
    %c0_23 = arith.constant 0 : index
    %90 = vector.load %arg4[%c0_22, %c0_23] : memref<32x128xbf16, #tpu.memory_space<vmem>>, vector<32x128xbf16>
    %cst_24 = arith.constant dense<0.000000e+00> : vector<8x128xf32>
    %91 = tpu.matmul %89, %90, %cst_24 {dimension_numbers = #tpu.dot_dimension_numbers<[1], [0], [0], [1], [0, 0, 1, 1], [], []>} : vector<8x32xbf16>, vector<32x128xbf16>, vector<8x128xf32> -> vector<8x128xf32>
    %c0_25 = arith.constant 0 : index
    %c0_26 = arith.constant 0 : index
    %92 = vector.load %arg5[%c0_25, %c0_26] : memref<1x128xf32, #tpu.memory_space<vmem>>, vector<1x128xf32>
    %93 = vector.broadcast %92 : vector<1x128xf32> to vector<8x128xf32>
    %94 = arith.addf %91, %93 : vector<8x128xf32>
    %95 = arith.addf %0, %94 : vector<8x128xf32>
    %c0_27 = arith.constant 0 : index
    %c0_28 = arith.constant 0 : index
    %96 = vector.load %arg6[%c0_27, %c0_28] : memref<1x128xf32, #tpu.memory_space<vmem>>, vector<1x128xf32>
    %c0_29 = arith.constant 0 : index
    %c0_30 = arith.constant 0 : index
    %97 = vector.load %arg7[%c0_29, %c0_30] : memref<1x128xf32, #tpu.memory_space<vmem>>, vector<1x128xf32>
    %cst_31 = arith.constant dense<0.000000e+00> : vector<8xf32>
    %98 = vector.multi_reduction <add>, %95, %cst_31 [1] : vector<8x128xf32> to vector<8xf32>
    %99 = vector.shape_cast %98 : vector<8xf32> to vector<8x1xf32>
    %cst_32 = arith.constant 3.125000e-02 : f32
    %100 = vector.broadcast %cst_32 : f32 to vector<8x1xf32>
    %101 = arith.mulf %99, %100 : vector<8x1xf32>
    %102 = vector.broadcast %101 : vector<8x1xf32> to vector<8x128xf32>
    %103 = arith.subf %95, %102 : vector<8x128xf32>
    %104 = vector.broadcast %6 : vector<1x128xf32> to vector<8x128xf32>
    %105 = arith.mulf %103, %104 : vector<8x128xf32>
    %106 = arith.mulf %105, %105 : vector<8x128xf32>
    %cst_33 = arith.constant dense<0.000000e+00> : vector<8xf32>
    %107 = vector.multi_reduction <add>, %106, %cst_33 [1] : vector<8x128xf32> to vector<8xf32>
    %108 = vector.shape_cast %107 : vector<8xf32> to vector<8x1xf32>
    %cst_34 = arith.constant 3.125000e-02 : f32
    %109 = vector.broadcast %cst_34 : f32 to vector<8x1xf32>
    %110 = arith.mulf %108, %109 : vector<8x1xf32>
    %cst_35 = arith.constant 9.99999974E-6 : f32
    %111 = vector.broadcast %cst_35 : f32 to vector<8x1xf32>
    %112 = arith.addf %110, %111 : vector<8x1xf32>
    %113 = math.rsqrt %112 : vector<8x1xf32>
    %114 = vector.broadcast %113 : vector<8x1xf32> to vector<8x128xf32>
    %115 = arith.mulf %105, %114 : vector<8x128xf32>
    %116 = vector.broadcast %96 : vector<1x128xf32> to vector<8x128xf32>
    %117 = arith.mulf %115, %116 : vector<8x128xf32>
    %118 = vector.broadcast %97 : vector<1x128xf32> to vector<8x128xf32>
    %119 = arith.addf %117, %118 : vector<8x128xf32>
    %120 = arith.truncf %119 : vector<8x128xf32> to vector<8x128xbf16>
    %c0_36 = arith.constant 0 : index
    %c0_37 = arith.constant 0 : index
    %121 = vector.load %arg8[%c0_36, %c0_37] : memref<128x128xbf16, #tpu.memory_space<vmem>>, vector<128x128xbf16>
    %cst_38 = arith.constant dense<0.000000e+00> : vector<8x128xf32>
    %122 = tpu.matmul %120, %121, %cst_38 {dimension_numbers = #tpu.dot_dimension_numbers<[1], [0], [0], [1], [0, 0, 1, 1], [], []>} : vector<8x128xbf16>, vector<128x128xbf16>, vector<8x128xf32> -> vector<8x128xf32>
    %c0_39 = arith.constant 0 : index
    %c0_40 = arith.constant 0 : index
    %123 = vector.load %arg9[%c0_39, %c0_40] : memref<1x128xf32, #tpu.memory_space<vmem>>, vector<1x128xf32>
    %124 = vector.broadcast %123 : vector<1x128xf32> to vector<8x128xf32>
    %125 = arith.addf %122, %124 : vector<8x128xf32>
    %cst_41 = arith.constant 0.000000e+00 : f32
    %126 = vector.broadcast %cst_41 : f32 to vector<8x128xf32>
    %127 = arith.maximumf %125, %126 : vector<8x128xf32>
    %128 = arith.truncf %127 : vector<8x128xf32> to vector<8x128xbf16>
    %c0_42 = arith.constant 0 : index
    %c0_43 = arith.constant 0 : index
    %129 = vector.load %arg10[%c0_42, %c0_43] : memref<128x128xbf16, #tpu.memory_space<vmem>>, vector<128x128xbf16>
    %cst_44 = arith.constant dense<0.000000e+00> : vector<8x128xf32>
    %130 = tpu.matmul %128, %129, %cst_44 {dimension_numbers = #tpu.dot_dimension_numbers<[1], [0], [0], [1], [0, 0, 1, 1], [], []>} : vector<8x128xbf16>, vector<128x128xbf16>, vector<8x128xf32> -> vector<8x128xf32>
    %c0_45 = arith.constant 0 : index
    %c0_46 = arith.constant 0 : index
    %131 = vector.load %arg11[%c0_45, %c0_46] : memref<1x128xf32, #tpu.memory_space<vmem>>, vector<1x128xf32>
    %132 = vector.broadcast %131 : vector<1x128xf32> to vector<8x128xf32>
    %133 = arith.addf %130, %132 : vector<8x128xf32>
    %134 = arith.addf %119, %133 : vector<8x128xf32>
    %c0_47 = arith.constant 0 : index
    %c0_48 = arith.constant 0 : index
    %135 = vector.load %arg12[%c0_47, %c0_48] : memref<1x128xf32, #tpu.memory_space<vmem>>, vector<1x128xf32>
    %c0_49 = arith.constant 0 : index
    %c0_50 = arith.constant 0 : index
    %136 = vector.load %arg13[%c0_49, %c0_50] : memref<1x128xf32, #tpu.memory_space<vmem>>, vector<1x128xf32>
    %cst_51 = arith.constant dense<0.000000e+00> : vector<8xf32>
    %137 = vector.multi_reduction <add>, %134, %cst_51 [1] : vector<8x128xf32> to vector<8xf32>
    %138 = vector.shape_cast %137 : vector<8xf32> to vector<8x1xf32>
    %cst_52 = arith.constant 3.125000e-02 : f32
    %139 = vector.broadcast %cst_52 : f32 to vector<8x1xf32>
    %140 = arith.mulf %138, %139 : vector<8x1xf32>
    %141 = vector.broadcast %140 : vector<8x1xf32> to vector<8x128xf32>
    %142 = arith.subf %134, %141 : vector<8x128xf32>
    %143 = vector.broadcast %6 : vector<1x128xf32> to vector<8x128xf32>
    %144 = arith.mulf %142, %143 : vector<8x128xf32>
    %145 = arith.mulf %144, %144 : vector<8x128xf32>
    %cst_53 = arith.constant dense<0.000000e+00> : vector<8xf32>
    %146 = vector.multi_reduction <add>, %145, %cst_53 [1] : vector<8x128xf32> to vector<8xf32>
    %147 = vector.shape_cast %146 : vector<8xf32> to vector<8x1xf32>
    %cst_54 = arith.constant 3.125000e-02 : f32
    %148 = vector.broadcast %cst_54 : f32 to vector<8x1xf32>
    %149 = arith.mulf %147, %148 : vector<8x1xf32>
    %cst_55 = arith.constant 9.99999974E-6 : f32
    %150 = vector.broadcast %cst_55 : f32 to vector<8x1xf32>
    %151 = arith.addf %149, %150 : vector<8x1xf32>
    %152 = math.rsqrt %151 : vector<8x1xf32>
    %153 = vector.broadcast %152 : vector<8x1xf32> to vector<8x128xf32>
    %154 = arith.mulf %144, %153 : vector<8x128xf32>
    %155 = vector.broadcast %135 : vector<1x128xf32> to vector<8x128xf32>
    %156 = arith.mulf %154, %155 : vector<8x128xf32>
    %157 = vector.broadcast %136 : vector<1x128xf32> to vector<8x128xf32>
    %158 = arith.addf %156, %157 : vector<8x128xf32>
    %c0_56 = arith.constant 0 : index
    %c0_57 = arith.constant 0 : index
    %159 = vector.load %arg14[%c0_56, %c0_57] : memref<8x128xf32, #tpu.memory_space<vmem>>, vector<8x128xf32>
    tpu.vector_store %arg14[%c0_56, %c0_57], %158 {strides = array<i32>} : memref<8x128xf32, #tpu.memory_space<vmem>>, vector<8x128xf32>,
    return
  }
  func.func @transform_0(%arg0: i32) -> (i32, i32) {
    %c0_i32 = arith.constant 0 : i32
    %c0_i32_0 = arith.constant 0 : i32
    return %arg0, %c0_i32 : i32, i32
  }
  func.func @transform_1(%arg0: i32) -> (i32, i32) {
    %c0_i32 = arith.constant 0 : i32
    %c0_i32_0 = arith.constant 0 : i32
    %c0_i32_1 = arith.constant 0 : i32
    return %c0_i32, %c0_i32_0 : i32, i32
  }
  func.func @transform_2(%arg0: i32) -> (i32, i32) {
    %c0_i32 = arith.constant 0 : i32
    %c0_i32_0 = arith.constant 0 : i32
    %c0_i32_1 = arith.constant 0 : i32
    return %c0_i32, %c0_i32_0 : i32, i32
  }
  func.func @transform_3(%arg0: i32) -> (i32, i32) {
    %c0_i32 = arith.constant 0 : i32
    %c0_i32_0 = arith.constant 0 : i32
    %c0_i32_1 = arith.constant 0 : i32
    return %c0_i32, %c0_i32_0 : i32, i32
  }
  func.func @transform_4(%arg0: i32) -> (i32, i32) {
    %c0_i32 = arith.constant 0 : i32
    %c0_i32_0 = arith.constant 0 : i32
    %c0_i32_1 = arith.constant 0 : i32
    return %c0_i32, %c0_i32_0 : i32, i32
  }
  func.func @transform_5(%arg0: i32) -> (i32, i32) {
    %c0_i32 = arith.constant 0 : i32
    %c0_i32_0 = arith.constant 0 : i32
    %c0_i32_1 = arith.constant 0 : i32
    return %c0_i32, %c0_i32_0 : i32, i32
  }
  func.func @transform_6(%arg0: i32) -> (i32, i32) {
    %c0_i32 = arith.constant 0 : i32
    %c0_i32_0 = arith.constant 0 : i32
    %c0_i32_1 = arith.constant 0 : i32
    return %c0_i32, %c0_i32_0 : i32, i32
  }
  func.func @transform_7(%arg0: i32) -> (i32, i32) {
    %c0_i32 = arith.constant 0 : i32
    %c0_i32_0 = arith.constant 0 : i32
    %c0_i32_1 = arith.constant 0 : i32
    return %c0_i32, %c0_i32_0 : i32, i32
  }
  func.func @transform_8(%arg0: i32) -> (i32, i32) {
    %c0_i32 = arith.constant 0 : i32
    %c0_i32_0 = arith.constant 0 : i32
    %c0_i32_1 = arith.constant 0 : i32
    return %c0_i32, %c0_i32_0 : i32, i32
  }
  func.func @transform_9(%arg0: i32) -> (i32, i32) {
    %c0_i32 = arith.constant 0 : i32
    %c0_i32_0 = arith.constant 0 : i32
    %c0_i32_1 = arith.constant 0 : i32
    return %c0_i32, %c0_i32_0 : i32, i32
  }
  func.func @transform_10(%arg0: i32) -> (i32, i32) {
    %c0_i32 = arith.constant 0 : i32
    %c0_i32_0 = arith.constant 0 : i32
    %c0_i32_1 = arith.constant 0 : i32
    return %c0_i32, %c0_i32_0 : i32, i32
  }
  func.func @transform_11(%arg0: i32) -> (i32, i32) {
    %c0_i32 = arith.constant 0 : i32
    %c0_i32_0 = arith.constant 0 : i32
    %c0_i32_1 = arith.constant 0 : i32
    return %c0_i32, %c0_i32_0 : i32, i32
  }
  func.func @transform_12(%arg0: i32) -> (i32, i32) {
    %c0_i32 = arith.constant 0 : i32
    %c0_i32_0 = arith.constant 0 : i32
    %c0_i32_1 = arith.constant 0 : i32
    return %c0_i32, %c0_i32_0 : i32, i32
  }
  func.func @transform_13(%arg0: i32) -> (i32, i32) {
    %c0_i32 = arith.constant 0 : i32
    %c0_i32_0 = arith.constant 0 : i32
    return %arg0, %c0_i32 : i32, i32
  }
}

</mosaic_0001>

<bundles_post_ra>
// kernel: tpu_custom_call.1
= control target key start
LH: loop header
LB: loop body
LE: loop exit
PB: predicated region body
PF: predicated region fallthrough
CT: control target
= control target key end

     0   :  { %s2786_s0 = inlined_call_operand.hbm [shape: f32[16,128], index: 0, kind: input, shape index: {}]   ;;  %s2787_s1 = inlined_call_operand.vmem [shape: bf16[128,96], index: 1, kind: input, shape index: {}]   ;;  %s2788_s2 = inlined_call_operand.hbm [shape: f32[1,96], index: 2, kind: input, shape index: {}]   ;;  %s2789_s3 = inlined_call_operand.hbm [shape: bf16[32,128], index: 3, kind: input, shape index: {}]   ;;  %s2790_s4 = inlined_call_operand.hbm [shape: f32[1,128], index: 4, kind: input, shape index: {}]   ;;  %s2791_s5 = inlined_call_operand.hbm [shape: f32[1,128], index: 5, kind: input, shape index: {}]   ;;  %s2792_s6 = inlined_call_operand.hbm [shape: f32[1,128], index: 6, kind: input, shape index: {}]   ;;  %s2793_s7 = inlined_call_operand.vmem [shape: bf16[128,128], index: 7, kind: input, shape index: {}]   ;;  %s2794_s8 = inlined_call_operand.hbm [shape: f32[1,128], index: 8, kind: input, shape index: {}]   ;;  %s2795_s9 = inlined_call_operand.vmem [shape: bf16[128,128], index: 9, kind: input, shape index: {}]   ;;  %s2796_s10 = inlined_call_operand.vmem [shape: f32[1,128], index: 10, kind: input, shape index: {}]   ;;  %s2797_s11 = inlined_call_operand.vmem [shape: f32[1,128], index: 11, kind: input, shape index: {}]   ;;  %s2798_s12 = inlined_call_operand.vmem [shape: f32[1,128], index: 12, kind: input, shape index: {}]   ;;  %s2799_s13 = inlined_call_operand.hbm [shape: f32[16,128], index: 13, kind: output, shape index: {}]  }
   0x1   :  { %2805 = sst [smem:[#allocation22_spill]] %s2788_s2 }
   0x2   :  { %2806 = sst [smem:[#allocation23_spill]] %s2789_s3 }
   0x3   :  { %2807 = sst [smem:[#allocation24_spill]] %s2790_s4 }
   0x4   :  { %2808 = sst [smem:[#allocation25_spill]] %s2791_s5 }
   0x5   :  { %2809 = sst [smem:[#allocation26_spill]] %s2792_s6 }
   0x6   :  { %2810 = sst [smem:[#allocation27_spill]] %s2794_s8 }
   0x7   :  { %18 = vsyncpa [#allocation3], 0 }
   0x8   :  { %20 = vsyncpa [#allocation3 + $0x1], 0 }
   0x9   :  { %21 = vsyncpa [#allocation6], 0 }
   0xa   :  { %22 = vsyncpa [#allocation9], 0 }
   0xb   :  { %23 = vsyncpa [#allocation12], 0 }
   0xc   :  { %24 = vsyncpa [#allocation4], 0 }
   0xd   :  { %26 = vsyncpa [#allocation4 + $0x1], 0  ;;  %s2366_s25 = smov 0   ;;  %s2368_s26 = smov 0  }
   0xe   :  { %s2370_s27 = smov 0   ;;  %s2372_s28 = smov 0  }
   0xf LB: > { %2811 = sst [smem:[#allocation20_spill]] %s2264_s27  ;;  %s2270_s29 = smov [#allocation5]   ;;  %s2268_s28 = sphi %s2372_s28, %s2843_s28   ;;  %s2264_s27 = sphi %s2370_s27, %s2840_s27   ;;  %s2260_s26 = sphi %s2368_s26, %s2842_s26   ;;  %s2256_s25 = sphi %s2366_s25, %s2841_s25  }
  0x10   : > { %s357_s30 = sshll.u32 %s2270_s29, 4  ;;  %s2387_s14 = sadd.s32 4294967295, %s2268_s28   ;;  %s358_s30 = int_to_ptr.vmem [resolvable:$true] %s357_s30 }
  0x11   : > { %p1608_p0 = scmp.ge.s32.totalorder %s2268_s28, 1  ;;  %p2800_p1 = scmp.eq.s32.totalorder %s2387_s14, 0 }
  0x12   : > { %p341_p2 = scmp.lt.s32.totalorder %s2268_s28, 3  ;;  %s2271_s16 = smov [#allocation8]  }
  0x13   : > { %s381_s17 = sshll.u32 %s2271_s16, 4  ;;  %s2272_s18 = smov [#allocation11]   ;;  %s2399_s17 = int_to_ptr.vmem [resolvable:$true] %s381_s17 }
  0x14   : > { %p2392_p3 = pnand %p1608_p0, %p341_p2  ;;  %s403_s19 = sshll.u32 %s2272_s18, 4  ;;  %s2407_s19 = int_to_ptr.vmem [resolvable:$true] %s403_s19 }
  0x15   : > { %s2273_s21 = smov [#allocation7]   ;;  %s2019_s24 = scalar_lea.vmem %s358_s30, 16 }
  0x16   : > { %s2812_s15 = scalar_select %p2392_p3, 1, 0 }
  0x17   : > { %p1865_p5 = pneg %p2392_p3  ;;  %s2409_s22 = sshll.u32 %s2273_s21, 4  ;;  %s368_s22 = int_to_ptr.vmem [resolvable:$true] %s2409_s22 }
  0x18   : > { %p2020_p8 = scmp.ne.s32.totalorder %s358_s30, %s2019_s24  ;;  %s2026_s29 = scalar_lea.vmem %s358_s30, 32 }
  0x19   : > { %p2403_p6 = pnand %p1865_p5, %p2800_p1  ;;  %p2027_p11 = scmp.lt.s32.totalorder %s358_s30, %s358_s30 }
  0x1a   : > { %p2028_p12 = scmp.lt.s32.totalorder %s2026_s29, %s2019_s24 }
  0x1b   : > { %p2413_p7 = pneg %p2403_p6 }
  0x1c   : > { %p2029_p13 = por %p2028_p12, %p2027_p11 }
  0x1d   : > { %p2022_p9 = pnand %p2020_p8, %p2413_p7 }
  0x1f   : > { %p2023_p10 = pneg %p2022_p9 }
  0x21   : > { %p2030_p0 = pnand %p2029_p13, %p2023_p10 }
  0x23   : > { %2033 = shalt.err (!%p2030_p0)
}
  0x24   : > { %s2815_s2 = sld [smem:[#allocation22_spill]]  ;;  %s2045_s21 = scalar_lea.vmem %s2399_s17, 16 }
  0x25   : > { %p2046_p2 = scmp.ne.s32.totalorder %s2399_s17, %s2045_s21  ;;  %s2052_s24 = scalar_lea.vmem %s2399_s17, 32 }
  0x26   : > { %p2053_p9 = scmp.lt.s32.totalorder %s2399_s17, %s2399_s17  ;;  %p2054_p10 = scmp.lt.s32.totalorder %s2052_s24, %s2045_s21 }
  0x27   : > { %p2048_p5 = pnand %p2046_p2, %p2413_p7 }
  0x28   : > { %p2055_p11 = por %p2054_p10, %p2053_p9 }
  0x29   : > { %p2049_p8 = pneg %p2048_p5 }
  0x2a   : > { %1868 = dma.hbm_to_vmem [thread:$0]  (!%p2403_p6), %s2815_s2, 16, %s358_s30, [#allocation6]  }
  0x2b   : > { %p2056_p12 = pnand %p2055_p11, %p2049_p8 }
  0x2d   : > { %2059 = shalt.err (!%p2056_p12)
}
  0x2e   : > { %s2816_s4 = sld [smem:[#allocation24_spill]]  ;;  %s2071_s30 = scalar_lea.vmem %s2407_s19, 16 }
  0x2f   : > { %p2072_p13 = scmp.ne.s32.totalorder %s2407_s19, %s2071_s30  ;;  %s2078_s18 = scalar_lea.vmem %s2407_s19, 32 }
  0x30   : > { %p2079_p5 = scmp.lt.s32.totalorder %s2407_s19, %s2407_s19  ;;  %p2080_p8 = scmp.lt.s32.totalorder %s2078_s18, %s2071_s30 }
  0x31   : > { %p2074_p0 = pnand %p2072_p13, %p2413_p7 }
  0x32   : > { %p2081_p9 = por %p2080_p8, %p2079_p5 }
  0x33   : > { %p2075_p2 = pneg %p2074_p0 }
  0x34   : > { %1874 = dma.hbm_to_vmem [thread:$0]  (!%p2403_p6), %s2816_s4, 16, %s2399_s17, [#allocation9]  }
  0x35   : > { %p2082_p10 = pnand %p2081_p9, %p2075_p2 }
  0x37   : > { %2085 = shalt.err (!%p2082_p10)
}
  0x38   : > { %s2817_s6 = sld [smem:[#allocation26_spill]]  ;;  %s2097_s17 = scalar_lea.vmem %s368_s22, 256 }
  0x39   : > { %p2098_p11 = scmp.ne.s32.totalorder %s368_s22, %s2097_s17  ;;  %p2105_p0 = scmp.lt.s32.totalorder %s368_s22, %s368_s22 }
  0x3a   : > { %p2106_p4 = scmp.lt.s32.totalorder %s2097_s17, %s2097_s17 }
  0x3b   : > { %p2100_p12 = pnand %p2098_p11, %p2413_p7 }
  0x3c   : > { %p2107_p5 = por %p2106_p4, %p2105_p0 }
  0x3d   : > { %p2101_p13 = pneg %p2100_p12 }
  0x3e   : > { %1880 = dma.hbm_to_vmem [thread:$0]  (!%p2403_p6), %s2817_s6, 16, %s2407_s19, [#allocation12]  }
  0x3f   : > { %p2108_p2 = pnand %p2107_p5, %p2101_p13 }
  0x41   : > { %2111 = shalt.err (!%p2108_p2)
}
  0x42   : > { %s2274_s29 = smov 64   ;;  %s2275_s16 = smov 4  }
  0x43   : > { %s2818_s3 = sld [smem:[#allocation23_spill]]  ;;  %s2276_s19 = smov [#allocation10]  }
  0x44   : > { %s392_s21 = sshll.u32 %s2276_s19, 4  ;;  %s2277_s24 = smov [#allocation13]   ;;  %s393_s21 = int_to_ptr.vmem [resolvable:$true] %s392_s21 }
  0x45   : > { %s417_s2 = sshll.u32 %s2277_s24, 4  ;;  %s2123_s4 = scalar_lea.vmem %s393_s21, 16  ;;  %s418_s2 = int_to_ptr.vmem [resolvable:$true] %s417_s2 }
  0x46   : > { %p2124_p8 = scmp.ne.s32.totalorder %s393_s21, %s2123_s4  ;;  %s2130_s17 = scalar_lea.vmem %s393_s21, 32 }
  0x47   : > { %p2131_p10 = scmp.lt.s32.totalorder %s393_s21, %s393_s21  ;;  %p2132_p11 = scmp.lt.s32.totalorder %s2130_s17, %s2123_s4 }
  0x48   : > { %p2126_p4 = pnand %p2124_p8, %p2413_p7 }
  0x49   : > { %1871 = dma.hbm_to_vmem [thread:$0]  (!%p2403_p6), %s2818_s3, 256, %s368_s22, [#allocation6], %s2274_s29, %s2274_s29, %s2275_s16  }
  0x4a   : > { %p2127_p9 = pneg %p2126_p4  ;;  %p2133_p12 = por %p2132_p11, %p2131_p10 }
  0x4c   : > { %p2134_p13 = pnand %p2133_p12, %p2127_p9 }
  0x4e   : > { %2137 = shalt.err (!%p2134_p13)
}
  0x4f   : > { %s2819_s5 = sld [smem:[#allocation25_spill]]  ;;  %s2149_s16 = scalar_lea.vmem %s418_s2, 16 }
  0x50   : > { %p2150_p0 = scmp.ne.s32.totalorder %s418_s2, %s2149_s16  ;;  %s2156_s30 = scalar_lea.vmem %s418_s2, 32 }
  0x51   : > { %p2157_p8 = scmp.lt.s32.totalorder %s418_s2, %s418_s2  ;;  %p2158_p4 = scmp.lt.s32.totalorder %s2156_s30, %s2149_s16 }
  0x52   : > { %p2152_p5 = pnand %p2150_p0, %p2413_p7 }
  0x53   : > { %p2159_p1 = por %p2158_p4, %p2157_p8 }
  0x54   : > { %p2153_p2 = pneg %p2152_p5 }
  0x55   : > { %1877 = dma.hbm_to_vmem [thread:$0]  (!%p2403_p6), %s2819_s5, 16, %s393_s21, [#allocation9]  }
  0x56   : > { %p2160_p3 = pnand %p2159_p1, %p2153_p2 }
  0x58   : > { %2163 = shalt.err (!%p2160_p3)
}
  0x59   : > { %s2820_s8 = sld [smem:[#allocation27_spill]]  ;;  %s1607_s23 = sadd.s32 4294967294, %s2268_s28  }
  0x5a   : > { %s2474_s20 = sadd.s32 1, %s2268_s28   ;;  %s39_s21 = sadd.s32 1, %s2264_s27 }
  0x5b   : > { %s36_s19 = ssub.s32 %s2268_s28, %s2474_s20  ;;  %p46_p3 = scmp.ne.s32.totalorder %s2264_s27, %s2260_s26 }
  0x5c   : > { %p37_p1 = scmp.eq.s32.totalorder %s36_s19, 0  ;;  %p47_p7 = scmp.eq.s32.totalorder %s2268_s28, 0 }
  0x5d   : > { %p52_p9 = scmp.ne.s32.totalorder %s2260_s26, %s2256_s25  ;;  %p2823_p11 = scmp.eq.s32.totalorder %s2387_s14, 0 }
  0x5e   : > { %s2485_s24 = scalar_select %p37_p1, %s2264_s27, %s39_s21  }
  0x5f   : > { %1883 = dma.hbm_to_vmem [thread:$0]  (!%p2403_p6), %s2820_s8, 16, %s418_s2, [#allocation12]  }
  0x60   : > { %2821 = sst [smem:[#allocation21_spill]] %s2485_s24  ;;  %p2487_p10 = por %p47_p7, %p46_p3 }
  0x61   : > { %p2493_p6 = por %p2823_p11, %p52_p9  ;;  %p328_p12 = scmp.eq.s32.totalorder %s2387_s14, 1 }
  0x62   : > { %p334_p13 = scmp.eq.s32.totalorder %s1607_s23, 1  ;;  %p1898_p0 = scmp.lt.s32.totalorder %s2268_s28, 2 }
  0x63   : > { %s2824_s2 = scalar_select %p2493_p6, 1, 0 }
  0x64   : > { %s440_s22 = sand.u32 1, %s2264_s27   ;;  %p2500_p5 = por %p328_p12, %p46_p3 }
  0x65   : > { %p2504_p2 = por %p334_p13, %p52_p9  ;;  %s1616_s30 = sshll.u32 %s440_s22, 3 }
  0x66   : > { %s2825_s29 = scalar_select %p2500_p5, 1, 0 }
  0x67   : > { %s2826_s16 = scalar_select %p2504_p2, 1, 0 }
  0x68   : > { %s1617_s4 = sshll.u32 %s2268_s28, 7  ;;  %s444_s23 = scalar_lea.vmem [#allocation2], %s1616_s30 }
  0x69   : > { %s2512_s21 = scalar_lea.hbm %s2786_s0, %s1617_s4  ;;  %s451_s3 = sshll.u32 %s444_s23, 4  ;;  %s452_s3 = int_to_ptr.vmem [resolvable:$true] %s451_s3 }
  0x6a   : > { %p2516_p8 = pnand %p1898_p0, %p2487_p10  ;;  %s441_s6 = scalar_lea.sflag [#allocation3], %s440_s22 }
  0x6b   : > { %s2164_s8 = scalar_lea.hbm %s2512_s21, 128  ;;  %s2169_s19 = scalar_lea.hbm %s2786_s0, 256 }
  0x6c   : > { %p2165_p4 = scmp.ne.s32.totalorder %s2512_s21, %s2164_s8  ;;  %p2166_p1 = pneg %p2516_p8 }
  0x6d   : > { %p2170_p9 = scmp.lt.s32.totalorder %s2512_s21, %s2786_s0  ;;  %p2171_p10 = scmp.lt.s32.totalorder %s2169_s19, %s2164_s8 }
  0x6e   : > { %p2167_p3 = pnand %p2166_p1, %p2165_p4 }
  0x6f   : > { %p2172_p11 = por %p2171_p10, %p2170_p9 }
  0x70   : > { %p2168_p7 = pneg %p2167_p3 }
  0x72   : > { %p2173_p12 = pnand %p2172_p11, %p2168_p7 }
  0x74   : > { %2176 = shalt.err (!%p2173_p12)
}
  0x75   : > { %s2177_s17 = scalar_lea.vmem %s452_s3, 128  ;;  %s2278_s22 = smov [#allocation2]  }
  0x76   : > { %p2178_p13 = scmp.ne.s32.totalorder %s452_s3, %s2177_s17  ;;  %s2182_s24 = sshll.u32 %s2278_s22, 4  ;;  %s2183_s24 = int_to_ptr.vmem [resolvable:$false] %s2182_s24 }
  0x77   : > { %s2184_s27 = scalar_lea.vmem %s2183_s24, 256  ;;  %p2185_p4 = scmp.lt.s32.totalorder %s452_s3, %s2183_s24 }
  0x78   : > { %p2180_p0 = pnand %p2178_p13, %p2166_p1  ;;  %p2186_p3 = scmp.lt.s32.totalorder %s2184_s27, %s2177_s17 }
  0x7a   : > { %p2181_p2 = pneg %p2180_p0  ;;  %p2187_p5 = por %p2186_p3, %p2185_p4 }
  0x7c   : > { %p2188_p6 = pnand %p2187_p5, %p2181_p2 }
  0x7e   : > { %2191 = shalt.err (!%p2188_p6)
}
  0x7f   : > { %1887 = dma.hbm_to_vmem [thread:$0]  (!%p2516_p8), %s2512_s21, 128, %s452_s3, %s441_s6  }
  0x80   : > { %p2828_p7 = scmp.ne.s32.totalorder %s2812_s15, 0 }
  0x81   : > { %s2537_s8 = sand.u32 (!%p2828_p7), 1, %s2260_s26   ;;  %p2829_p6 = scmp.ne.s32.totalorder (!%p2828_p7), %s2824_s2, 0 }
  0x82   : > { %460 = sbr.rel (%p2828_p7) target bundleno = 3073 (0xc01), region = 72  ;;  %s1619_s4 = sshll.u32 (!%p2828_p7), %s2537_s8, 3 }
  0x83   : > { %s463_s24 = scalar_lea.sflag (!%p2828_p7), [#allocation3], %s2537_s8  ;;  %s2543_s27 = scalar_lea.vmem (!%p2828_p7), [#allocation2], %s1619_s4 }
  0x87   : > { %2235 = dma.done.wait (%p2829_p6), %s463_s24, 128  }
  0x88   : > { %2237 = vsyncadd (%p2829_p6), %s463_s24, 4294967168  ;;  %p2830_p5 = scmp.eq.s32.totalorder %s2387_s14, 0 }
  0x8a   : > { %2239 = dma.done.wait (%p2830_p5), [#allocation6], 272   ;;  %p2831_p2 = pmov %p2830_p5 }
  0x8c   : > { %2241 = vsyncadd (%p2831_p2), [#allocation6], 4294967024  ;;  %p2832_p8 = pmov %p2831_p2 }
  0x8d   : > { %p2833_p1 = pmov %p2831_p2 }
  0x8e   : > { %2243 = dma.done.wait (%p2832_p8), [#allocation9], 32  }
  0x8f   : > { %2245 = vsyncadd (%p2833_p1), [#allocation9], 4294967264  ;;  %p2834_p9 = pmov %p2833_p1 }
  0x90   : > { %p2835_p10 = pmov %p2833_p1 }
  0x91   : > { %2247 = dma.done.wait (%p2834_p9), [#allocation12], 32  }
  0x92   : > { %2249 = vsyncadd (%p2835_p10), [#allocation12], 4294967264  ;;  %v2279_v0 = vmov 0.0   ;;  %vm2280_vm0 = vmmov 0   ;;  %v1962_v1 = vld [vmem:[%s2787_s1 + $0x38] sm:$0xff]   ;;  %v1963_v2 = vld [vmem:[%s2787_s1 + $0x30] sm:$0xff]  }
  0x93   : > { %1721 = vmatprep.subr.bf16.mxu0 %v2279_v0  ;;  %1737 = vmatprep.mubr.msk.bf16.mxu0 %vm2280_vm0, %v2279_v0  ;;  %v1964_v3 = vld [vmem:[%s2787_s1 + $0x28] sm:$0xff]   ;;  %v1965_v4 = vld [vmem:[%s2787_s1 + $0x20] sm:$0xff]   ;;  %v1966_v5 = vld [vmem:[%s2787_s1 + $0x18] sm:$0xff]   ;;  %s2282_s15 = smov 96   ;;  %s2283_s2 = smov 88   ;;  %vm658_vm1 = vcmask 64512  }
  0x94   : > { %1741 = vmatprep.subr.bf16.mxu1 %v2279_v0  ;;  %1743 = vmatprep.mubr.msk.bf16.mxu1 %vm2280_vm0, %v2279_v0  ;;  %v1967_v6 = vld [vmem:[%s2787_s1 + $0x10] sm:$0xff]   ;;  %v1968_v7 = vld [vmem:[%s2787_s1 + $0x8] sm:$0xff]   ;;  %v1969_v8 = vld [vmem:[%s2787_s1] sm:$0xff]   ;;  %vm722_vm2 = vcmask 1043456   ;;  %s2284_s21 = smov 72   ;;  %s2285_s18 = smov 120  }
  0x95   : > { %1722 = vmatpush3.bf16.msra.mxu0 %v1962_v1  ;;  %v2598_v9 = vld [vmem:[%s2543_s27] sm:$0xff]  ;;  %v1628_v11 = vld [vmem:[#allocation5] ss:$0 sm:$0xff]  ;;  %s2281_s27 = smov 64   ;;  %s2286_s19 = smov 80   ;;  %vm1110_vm3 = vcmask 130048  }
  0x96   : > { %1723 = vmatprep.subr.bf16.mxu0 %v2279_v0  ;;  %v535_v10 = vpack.c.bf16 %v2598_v9, %v2598_v9  ;;  %s2287_s30 = smov 112   ;;  %s2288_s23 = smov 104   ;;  %vm1112_vm4 = vcmask 195584   ;;  %vm1138_vm5 = vcmask 261120  }
  0x97   : > { %s2289_s17 = smov 56   ;;  %s2290_s22 = smov 40  }
  0x98   : > { %s2291_s24 = smov 48   ;;  %s2292_s3 = smov 8  }
  0x99   : > { %1724 = vmatpush3.bf16.msra.mxu0 %v1963_v2  ;;  %s2293_s5 = smov 16   ;;  %s2294_s6 = smov 24  }
  0x9a   : > { %1725 = vmatprep.subr.bf16.mxu0 %v2279_v0  ;;  %p2836_p12 = scmp.ne.s32.totalorder %s2825_s29, 0 }
  0x9d   : > { %1726 = vmatpush3.bf16.msra.mxu0 %v1964_v3 }
  0x9e   : > { %1727 = vmatprep.subr.bf16.mxu0 %v2279_v0 }
  0xa1   : > { %1728 = vmatpush3.bf16.msra.mxu0 %v1965_v4 }
  0xa2   : > { %1729 = vmatprep.subr.bf16.mxu0 %v2279_v0 }
  0xa5   : > { %1730 = vmatpush3.bf16.msra.mxu0 %v1966_v5 }
  0xa6   : > { %1731 = vmatprep.subr.bf16.mxu0 %v2279_v0 }
  0xa9   : > { %1732 = vmatpush3.bf16.msra.mxu0 %v1967_v6 }
  0xaa   : > { %1733 = vmatprep.subr.bf16.mxu0 %v2279_v0 }
  0xad   : > { %1734 = vmatpush3.bf16.msra.mxu0 %v1968_v7 }
  0xae   : > { %1735 = vmatprep.subr.bf16.mxu0 %v2279_v0 }
  0xb1   : > { %1736 = vmatpush3.bf16.msra.mxu0 %v1969_v8 }
  0xb2   : > { %1765 = vmatprep.subr.bf16.mxu0 %v2279_v0 }
  0xb4   : > { %1738 = vmatmul.mubr.bf16.vlgmr.msra.gmra.mxu0 %v535_v10 }
  0xb5   : > { %1767 = vmatprep.mubr.msk.bf16.mxu0 %vm2280_vm0, %v2279_v0 }
 0x174   : > { %v646_v12 = vpop.f32.mrf.mxu0 }
 0x175   : > { %v647_v13 = vadd.f32 %v1628_v11, %v646_v12 }
 0x176   : > { %v1739_v14 = vpop.f32.mrf.mxu0 }
 0x177   : > { %v2606_v15 = vpack.c.bf16 %v647_v13, %v647_v13  ;;  %v652_v20 = vmul.f32 0.35355338, %v647_v13 }
 0x178   : > { %v649_v16 = vpop.f32.mrf.mxu0 }
 0x179   : > { %717 = vrot.lane.b32.xlu1 %v2606_v15, %s2281_s27  ;;  %656 = vrot.lane.b32.xlu0 %v2606_v15, %s2282_s15  ;;  %v653_v22 = vpack.c.bf16 %v652_v20, %v652_v20 }
 0x17a   : > { %v1740_v17 = vpop.f32.mrf.mxu0 }
 0x17d   : > { %769 = vrot.lane.b32.xlu1 %v2606_v15, %s2283_s2  ;;  %s1467_s2 = scalar_lea.sflag [#allocation4], %s2537_s8 }
 0x1eb   : > { %v657_v18 = vpop.permute.xlu0 %656  ;;  %v718_v21 = vpop.permute.xlu1 %717 }
 0x1ec   : > { %v663_v19 = vsel %vm658_vm1, %v657_v18, 0  ;;  %v724_v23 = vsel %vm722_vm2, %v718_v21, 0 }
 0x1ed   : > { %1742 = vmatpush3.bf16.xpose.msra.mxu1 %v663_v19 }
 0x1ee   : > { %1747 = vmatprep.subr.bf16.mxu1 %v2279_v0 }
 0x1ef   : > { %v770_v34 = vpop.permute.xlu1 %769 }
 0x1f0   : > { %v775_v45 = vsel %vm658_vm1, %v770_v34, 0 }
 0x1f4   : > { %1744 = vmatmul.mubr.msk.bf16.vlgmr.msra.gmra.mxu1 %vm658_vm1, %v653_v22 }
 0x1f5   : > { %1748 = vmatpush3.bf16.msra.mxu1 %v724_v23  ;;  %1749 = vmatprep.mubr.msk.bf16.mxu1 %vm2280_vm0, %v2279_v0 }
 0x1f6   : > { %1753 = vmatprep.subr.bf16.mxu1 %v2279_v0 }
 0x2b4   : > { %v699_v24 = vpop.f32.mrf.mxu1 }
 0x2b5   : > { %v705_v25 = vsel %vm658_vm1, %v699_v24, -inf }
 0x2b6   : > { %706 = vmax.xlane.f32.xlu0 %v705_v25  ;;  %v1745_v26 = vpop.f32.mrf.mxu1 }
 0x2b8   : > { %v702_v27 = vpop.f32.mrf.mxu1 }
 0x2ba   : > { %v1746_v28 = vpop.f32.mrf.mxu1 }
 0x2cc   : > { %989 = vrot.lane.b32.xlu0 %v2606_v15, %s2284_s21 }
 0x33f   : > { %v707_v29 = vpop.xlane.xlu0 %706 }
 0x340   : > { %v708_v30 = vsub.f32 %v699_v24, %v707_v29 }
 0x342   : > { %v709_v31 = vmul.f32 1.442695, %v708_v30 }
 0x343   : > { %v990_v40 = vpop.permute.xlu0 %989 }
 0x344   : > { %1988 = vpow2.f32 %v709_v31  ;;  %v995_v43 = vsel %vm658_vm1, %v990_v40, 0 }
 0x351   : > { %v1989_v32 = vpop.eup %1988 }
 0x352   : > { %v711_v33 = vsel %vm658_vm1, %v1989_v32, 0.0 }
 0x353   : > { %712 = vadd.xlane.f32.xlu1 %v711_v33 }
 0x364   : > { %767 = vrot.lane.b32.xlu1 %v653_v22, %s2285_s18  ;;  %s2295_s18 = smov [#allocation14]  }
 0x368   : > { %879 = vrot.lane.b32.xlu1 %v2606_v15, %s2286_s19  ;;  %s2196_s19 = sshll.u32 %s2295_s18, 4  ;;  %s2197_s19 = int_to_ptr.vmem [resolvable:$false] %s2196_s19 }
 0x36c   : > { %877 = vrot.lane.b32.xlu1 %v653_v22, %s2287_s30 }
 0x370   : > { %987 = vrot.lane.b32.xlu1 %v653_v22, %s2288_s23 }
 0x3dc   : > { %v713_v35 = vpop.xlane.xlu1 %712 }
 0x3dd   : > { %1990 = vrcp.f32 %v713_v35 }
 0x3e0   : > { %v768_v36 = vpop.permute.xlu1 %767 }
 0x3e4   : > { %v880_v37 = vpop.permute.xlu1 %879 }
 0x3e5   : > { %v885_v38 = vsel %vm658_vm1, %v880_v37, 0  ;;  %v1970_v37 = vld [vmem:[#allocation7 + $0x8] sm:$0xff]  }
 0x3e6   : > { %1766 = vmatpush3.bf16.xpose.msra.mxu0 %v885_v38  ;;  %v1971_v38 = vld [vmem:[#allocation7] sm:$0xff]  }
 0x3e7   : > { %1777 = vmatprep.subr.bf16.mxu0 %v2279_v0 }
 0x3e8   : > { %v878_v42 = vpop.permute.xlu1 %877 }
 0x3ea   : > { %v1991_v39 = vpop.eup %1990 }
 0x3eb   : > { %v715_v41 = vmul.f32 %v1991_v39, %v1989_v32 }
 0x3ec   : > { %v988_v46 = vpop.permute.xlu1 %987 }
 0x3ed   : > { %1768 = vmatmul.mubr.msk.bf16.vlgmr.msra.gmra.mxu0 %vm658_vm1, %v878_v42  ;;  %v716_v44 = vpack.c.bf16 %v715_v41, %v715_v41 }
 0x3ee   : > { %1778 = vmatpush3.bf16.xpose.msra.mxu0 %v995_v43  ;;  %1779 = vmatprep.mubr.msk.bf16.mxu0 %vm2280_vm0, %v2279_v0 }
 0x3ef   : > { %1750 = vmatmul.mubr.msk.bf16.vlgmr.msra.gmra.mxu1 %vm658_vm1, %v716_v44  ;;  %1789 = vmatprep.subr.bf16.mxu0 %v2279_v0 }
 0x3f0   : > { %1754 = vmatpush3.bf16.xpose.msra.mxu1 %v775_v45  ;;  %1755 = vmatprep.mubr.msk.bf16.mxu1 %vm2280_vm0, %v2279_v0 }
 0x3f1   : > { %1759 = vmatprep.subr.bf16.mxu1 %v2279_v0 }
 0x3f5   : > { %1780 = vmatmul.mubr.msk.bf16.vlgmr.msra.gmra.mxu0 %vm658_vm1, %v988_v46 }
 0x3f6   : > { %1793 = vmatprep.mubr.msk.bf16.mxu0 %vm2280_vm0, %v2279_v0  ;;  %1790 = vmatpush3.bf16.msra.mxu0 %v1970_v37 }
 0x3f7   : > { %1756 = vmatmul.mubr.msk.bf16.vlgmr.msra.gmra.mxu1 %vm658_vm1, %v768_v36  ;;  %1791 = vmatprep.subr.bf16.mxu0 %v2279_v0 }
 0x3f8   : > { %1761 = vmatprep.mubr.msk.bf16.mxu1 %vm2280_vm0, %v2279_v0 }
 0x3fa   : > { %1792 = vmatpush3.bf16.msra.mxu0 %v1971_v38 }
 0x3fb   : > { %1817 = vmatprep.subr.bf16.mxu0 %v2279_v0 }
 0x4ad   : > { %v921_v47 = vpop.f32.mrf.mxu0 }
 0x4ae   : > { %v927_v48 = vsel %vm658_vm1, %v921_v47, -inf }
 0x4af   : > { %v2641_v49 = vpop.f32.mrf.mxu1  ;;  %928 = vmax.xlane.f32.xlu0 %v927_v48  ;;  %v1769_v50 = vpop.f32.mrf.mxu0 }
 0x4b1   : > { %v1751_v51 = vpop.f32.mrf.mxu1  ;;  %v924_v52 = vpop.f32.mrf.mxu0 }
 0x4b3   : > { %v763_v53 = vpop.f32.mrf.mxu1  ;;  %v1770_v54 = vpop.f32.mrf.mxu0 }
 0x4b5   : > { %v1752_v55 = vpop.f32.mrf.mxu1  ;;  %v1031_v56 = vpop.f32.mrf.mxu0 }
 0x4b6   : > { %v1037_v1 = vsel %vm658_vm1, %v1031_v56, -inf }
 0x4b7   : > { %v811_v57 = vpop.f32.mrf.mxu1  ;;  %v1781_v58 = vpop.f32.mrf.mxu0 }
 0x4b8   : > { %v817_v59 = vsel %vm658_vm1, %v811_v57, -inf }
 0x4b9   : > { %818 = vmax.xlane.f32.xlu1 %v817_v59  ;;  %v1757_v60 = vpop.f32.mrf.mxu1  ;;  %v1034_v61 = vpop.f32.mrf.mxu0  ;;  %v1645_v59 = vld [vmem:[#allocation8] ss:$0 sm:$0xff] }
 0x4bb   : > { %v814_v62 = vpop.f32.mrf.mxu1  ;;  %v1782_v63 = vpop.f32.mrf.mxu0 }
 0x4bd   : > { %v1758_v2 = vpop.f32.mrf.mxu1  ;;  %1038 = vmax.xlane.f32.xlu1 %v1037_v1 }
 0x538   : > { %v929_v3 = vpop.xlane.xlu0 %928 }
 0x539   : > { %v930_v4 = vsub.f32 %v921_v47, %v929_v3  ;;  %v1973_v3 = vld [vmem:[%s2793_s7 + $0x30] sm:$0xff]  }
 0x53b   : > { %v931_v5 = vmul.f32 1.442695, %v930_v4  ;;  %v536_v4 = vlaneseq }
 0x53d   : > { %1992 = vpow2.f32 %v931_v5  ;;  %v537_v5 = vand.u32 127, %v536_v4 }
 0x53f   : > { %vm538_vm6 = vcmp.lt.s32.totalorder %v537_v5, 32 }
 0x542   : > { %v819_v6 = vpop.xlane.xlu1 %818 }
 0x543   : > { %v820_v7 = vsub.f32 %v811_v57, %v819_v6 }
 0x545   : > { %v821_v8 = vmul.f32 1.442695, %v820_v7  ;;  %v2682_v7 = vsel %vm538_vm6, 1.0, %v2279_v0 }
 0x546   : > { %v1039_v10 = vpop.xlane.xlu1 %1038 }
 0x547   : > { %1994 = vpow2.f32 %v821_v8  ;;  %v1040_v11 = vsub.f32 %v1031_v56, %v1039_v10 }
 0x549   : > { %v1041_v12 = vmul.f32 1.442695, %v1040_v11 }
 0x54a   : > { %v1993_v13 = vpop.eup %1992 }
 0x54b   : > { %1996 = vpow2.f32 %v1041_v12  ;;  %v933_v14 = vsel %vm658_vm1, %v1993_v13, 0.0  ;;  %v1974_v12 = vld [vmem:[%s2793_s7 + $0x28] sm:$0xff]  }
 0x54c   : > { %934 = vadd.xlane.f32.xlu1 %v933_v14  ;;  %v1976_v14 = vld [vmem:[%s2793_s7 + $0x18] sm:$0xff]  }
 0x554   : > { %v1995_v16 = vpop.eup %1994 }
 0x555   : > { %v823_v17 = vsel %vm658_vm1, %v1995_v16, 0.0 }
 0x556   : > { %824 = vadd.xlane.f32.xlu1 %v823_v17  ;;  %v1978_v17 = vld [vmem:[%s2793_s7 + $0x8] sm:$0xff]  }
 0x558   : > { %v1997_v18 = vpop.eup %1996 }
 0x559   : > { %v1043_v19 = vsel %vm658_vm1, %v1997_v18, 0.0 }
 0x55a   : > { %1044 = vadd.xlane.f32.xlu0 %v1043_v19  ;;  %v1980_v19 = vld [vmem:[%s2795_s9 + $0x38] sm:$0xff]  }
 0x567   : > { %829 = vrot.lane.b32.xlu1 %v2606_v15, %s2289_s17 }
 0x56b   : > { %1049 = vrot.lane.b32.xlu1 %v2606_v15, %s2290_s22 }
 0x570   : > { %939 = vrot.lane.b32.xlu0 %v2606_v15, %s2291_s24  ;;  %s1672_s24 = sshll.u32 %s2387_s14, 7  ;;  %s2198_s14 = scalar_lea.vmem %s2197_s19, 256 }
 0x571   : > { %s1478_s15 = scalar_lea.hbm %s2799_s13, %s1672_s24 }
 0x5d5   : > { %v935_v20 = vpop.xlane.xlu1 %934 }
 0x5df   : > { %v825_v21 = vpop.xlane.xlu1 %824 }
 0x5e0   : > { %1998 = vrcp.f32 %v825_v21  ;;  %v1982_v21 = vld [vmem:[%s2795_s9 + $0x28] sm:$0xff]  }
 0x5e1   : > { %2000 = vrcp.f32 %v935_v20  ;;  %v1981_v20 = vld [vmem:[%s2795_s9 + $0x30] sm:$0xff]  }
 0x5e3   : > { %v830_v22 = vpop.permute.xlu1 %829  ;;  %v1045_v24 = vpop.xlane.xlu0 %1044 }
 0x5e4   : > { %v835_v23 = vsel %vm722_vm2, %v830_v22, 0  ;;  %2002 = vrcp.f32 %v1045_v24  ;;  %v1983_v22 = vld [vmem:[%s2795_s9 + $0x20] sm:$0xff]   ;;  %v1985_v24 = vld [vmem:[%s2795_s9 + $0x10] sm:$0xff]  }
 0x5e5   : > { %1760 = vmatpush3.bf16.msra.mxu1 %v835_v23  ;;  %v1984_v23 = vld [vmem:[%s2795_s9 + $0x18] sm:$0xff]  }
 0x5e6   : > { %1771 = vmatprep.subr.bf16.mxu1 %v2279_v0 }
 0x5e7   : > { %v940_v27 = vpop.permute.xlu0 %939  ;;  %v1050_v31 = vpop.permute.xlu1 %1049 }
 0x5e8   : > { %v945_v30 = vsel %vm722_vm2, %v940_v27, 0  ;;  %v1055_v34 = vsel %vm722_vm2, %v1050_v31, 0 }
 0x5ed   : > { %v1999_v25 = vpop.eup %1998 }
 0x5ee   : > { %v827_v26 = vmul.f32 %v1999_v25, %v1995_v16  ;;  %v2001_v29 = vpop.eup %2000  ;;  %v1977_v16 = vld [vmem:[%s2793_s7 + $0x10] sm:$0xff]  }
 0x5ef   : > { %v937_v15 = vmul.f32 %v2001_v29, %v1993_v13  ;;  %v1975_v13 = vld [vmem:[%s2793_s7 + $0x20] sm:$0xff]  }
 0x5f0   : > { %v828_v28 = vpack.c.bf16 %v827_v26, %v827_v26  ;;  %v1649_v29 = vld [vmem:[#allocation10] ss:$0 sm:$0xff] }
 0x5f1   : > { %v938_v32 = vpack.c.bf16 %v937_v15, %v937_v15  ;;  %v2003_v33 = vpop.eup %2002  ;;  %v1650_v15 = vld [vmem:[#allocation11] ss:$0 sm:$0xff] }
 0x5f2   : > { %1762 = vmatmul.mubr.msk.bf16.vlgmr.msra.gmra.mxu1 %vm658_vm1, %v828_v28  ;;  %v1047_v35 = vmul.f32 %v2003_v33, %v1997_v18  ;;  %v1979_v18 = vld [vmem:[%s2793_s7] sm:$0xff]  }
 0x5f3   : > { %1772 = vmatpush3.bf16.msra.mxu1 %v945_v30  ;;  %1773 = vmatprep.mubr.msk.bf16.mxu1 %vm2280_vm0, %v2279_v0 }
 0x5f4   : > { %1783 = vmatprep.subr.bf16.mxu1 %v2279_v0  ;;  %v1048_v36 = vpack.c.bf16 %v1047_v35, %v1047_v35  ;;  %v1987_v35 = vld [vmem:[%s2795_s9] sm:$0xff]  }
 0x5fa   : > { %1774 = vmatmul.mubr.msk.bf16.vlgmr.msra.gmra.mxu1 %vm658_vm1, %v938_v32 }
 0x5fb   : > { %1784 = vmatpush3.bf16.msra.mxu1 %v1055_v34  ;;  %1785 = vmatprep.mubr.msk.bf16.mxu1 %vm2280_vm0, %v2279_v0  ;;  %v1986_v34 = vld [vmem:[%s2795_s9 + $0x8] sm:$0xff]  }
 0x5fc   : > { %1797 = vmatprep.subr.bf16.mxu1 %v2279_v0 }
 0x602   : > { %1786 = vmatmul.mubr.msk.bf16.vlgmr.msra.gmra.mxu1 %vm658_vm1, %v1048_v36  ;;  %v1651_v36 = vld [vmem:[#allocation13] ss:$0 sm:$0xff] }
 0x603   : > { %1813 = vmatprep.mubr.msk.bf16.mxu1 %vm2280_vm0, %v2279_v0 }
 0x6b2   : > { %v871_v39 = vpop.f32.mrf.mxu1 }
 0x6b3   : > { %1098 = vrot.lane.b32.xlu1 %v871_v39, %s2292_s3  ;;  %s532_s3 = scalar_lea.vmem [#allocation14], %s1619_s4 }
 0x6b4   : > { %v1763_v40 = vpop.f32.mrf.mxu1 }
 0x6b6   : > { %v874_v41 = vpop.f32.mrf.mxu1 }
 0x6b8   : > { %v1764_v42 = vpop.f32.mrf.mxu1 }
 0x6ba   : > { %v981_v43 = vpop.f32.mrf.mxu1 }
 0x6bb   : > { %1102 = vrot.lane.b32.xlu0 %v981_v43, %s2293_s5  ;;  %s1480_s5 = sshll.u32 %s532_s3, 4  ;;  %s1481_s5 = int_to_ptr.vmem [resolvable:$true] %s1480_s5 }
 0x6bc   : > { %v1775_v44 = vpop.f32.mrf.mxu1  ;;  %s2192_s21 = scalar_lea.vmem %s1481_s5, 128  ;;  %p2199_p4 = scmp.lt.s32.totalorder %s1481_s5, %s2197_s19 }
 0x6bd   : > { %v1660_v44 = vld [vmem:[%s2796_s10] ss:$0 sm:$0xff]  ;;  %p2193_p11 = scmp.ne.s32.totalorder %s1481_s5, %s2192_s21  ;;  %p2200_p3 = scmp.lt.s32.totalorder %s2198_s14, %s2192_s21 }
 0x6be   : > { %v984_v45 = vpop.f32.mrf.mxu1 }
 0x6bf   : > { %p2194_p13 = pnand %p2193_p11, %p2836_p12  ;;  %p2201_p7 = por %p2200_p3, %p2199_p4 }
 0x6c0   : > { %v1776_v46 = vpop.f32.mrf.mxu1 }
 0x6c1   : > { %p2195_p0 = pneg %p2194_p13 }
 0x6c2   : > { %v1091_v47 = vpop.f32.mrf.mxu1 }
 0x6c3   : > { %1106 = vrot.lane.b32.xlu1 %v1091_v47, %s2294_s6  ;;  %p2202_p6 = pnand %p2201_p7, %p2195_p0 }
 0x6c4   : > { %v1787_v48 = vpop.f32.mrf.mxu1 }
 0x6c6   : > { %v1094_v50 = vpop.f32.mrf.mxu1 }
 0x6c8   : > { %v1788_v51 = vpop.f32.mrf.mxu1 }
 0x725   : > { %v1099_v52 = vpop.permute.xlu1 %1098 }
 0x726   : > { %v1109_v54 = vsel %vm658_vm1, %v2641_v49, %v1099_v52  ;;  %v1972_v49 = vld [vmem:[%s2793_s7 + $0x38] sm:$0xff]  }
 0x727   : > { %1798 = vmatpush3.bf16.msra.mxu1 %v1972_v49 }
 0x728   : > { %1799 = vmatprep.subr.bf16.mxu1 %v2279_v0 }
 0x72b   : > { %1800 = vmatpush3.bf16.msra.mxu1 %v1973_v3 }
 0x72c   : > { %1801 = vmatprep.subr.bf16.mxu1 %v2279_v0 }
 0x72d   : > { %v1103_v53 = vpop.permute.xlu0 %1102 }
 0x72e   : > { %v1111_v55 = vsel %vm1110_vm3, %v1109_v54, %v1103_v53 }
 0x72f   : > { %1802 = vmatpush3.bf16.msra.mxu1 %v1974_v12 }
 0x730   : > { %1803 = vmatprep.subr.bf16.mxu1 %v2279_v0 }
 0x733   : > { %1804 = vmatpush3.bf16.msra.mxu1 %v1975_v13 }
 0x734   : > { %1805 = vmatprep.subr.bf16.mxu1 %v2279_v0 }
 0x735   : > { %v1107_v56 = vpop.permute.xlu1 %1106 }
 0x736   : > { %v1113_v57 = vsel %vm1112_vm4, %v1111_v55, %v1107_v56 }
 0x737   : > { %v1114_v58 = vpack.c.bf16 %v1113_v57, %v1113_v57  ;;  %1806 = vmatpush3.bf16.msra.mxu1 %v1976_v14 }
 0x738   : > { %1807 = vmatprep.subr.bf16.mxu1 %v2279_v0 }
 0x739   : > { %1794 = vmatmul.mubr.msk.bf16.vlgmr.msra.gmra.mxu0 %vm1138_vm5, %v1114_v58 }
 0x73a   : > { %1833 = vmatprep.mubr.msk.bf16.mxu0 %vm2280_vm0, %v2279_v0  ;;  %1818 = vmatpush3.bf16.msra.mxu0 %v1980_v19 }
 0x73b   : > { %1808 = vmatpush3.bf16.msra.mxu1 %v1977_v16  ;;  %1819 = vmatprep.subr.bf16.mxu0 %v2279_v0 }
 0x73c   : > { %1809 = vmatprep.subr.bf16.mxu1 %v2279_v0 }
 0x73e   : > { %1820 = vmatpush3.bf16.msra.mxu0 %v1981_v20 }
 0x73f   : > { %1810 = vmatpush3.bf16.msra.mxu1 %v1978_v17  ;;  %1821 = vmatprep.subr.bf16.mxu0 %v2279_v0 }
 0x740   : > { %1811 = vmatprep.subr.bf16.mxu1 %v2279_v0 }
 0x742   : > { %1822 = vmatpush3.bf16.msra.mxu0 %v1982_v21 }
 0x743   : > { %1812 = vmatpush3.bf16.msra.mxu1 %v1979_v18  ;;  %1823 = vmatprep.subr.bf16.mxu0 %v2279_v0 }
 0x746   : > { %1824 = vmatpush3.bf16.msra.mxu0 %v1983_v22 }
 0x747   : > { %1825 = vmatprep.subr.bf16.mxu0 %v2279_v0 }
 0x74a   : > { %1826 = vmatpush3.bf16.msra.mxu0 %v1984_v23 }
 0x74b   : > { %1827 = vmatprep.subr.bf16.mxu0 %v2279_v0 }
 0x74e   : > { %1828 = vmatpush3.bf16.msra.mxu0 %v1985_v24 }
 0x74f   : > { %1829 = vmatprep.subr.bf16.mxu0 %v2279_v0 }
 0x752   : > { %1830 = vmatpush3.bf16.msra.mxu0 %v1986_v34 }
 0x753   : > { %1831 = vmatprep.subr.bf16.mxu0 %v2279_v0 }
 0x756   : > { %1832 = vmatpush3.bf16.msra.mxu0 %v1987_v35 }
 0x7f9   : > { %v1176_v60 = vpop.f32.mrf.mxu0 }
 0x7fa   : > { %v1177_v61 = vadd.f32 %v1645_v59, %v1176_v60  ;;  %v1669_v60 = vld [vmem:[%s2797_s11] ss:$0 sm:$0xff] }
 0x7fb   : > { %v1795_v62 = vpop.f32.mrf.mxu0 }
 0x7fc   : > { %v1182_v63 = vadd.f32 %v1177_v61, %v2598_v9  ;;  %v1670_v62 = vld [vmem:[%s2798_s12] ss:$0 sm:$0xff] }
 0x7fd   : > { %v1179_v1 = vpop.f32.mrf.mxu0 }
 0x7fe   : > { %1185 = vadd.xlane.f32.xlu0 %v1182_v63 }
 0x7ff   : > { %v1796_v2 = vpop.f32.mrf.mxu0 }
 0x887   : > { %v1186_v9 = vpop.xlane.xlu0 %1185 }
 0x888   : > { %v1187_v6 = vmul.f32 0.03125, %v1186_v9 }
 0x88a   : > { %v1188_v8 = vsub.f32 %v1182_v63, %v1187_v6 }
 0x88c   : > { %v1189_v10 = vmul.f32 %v2682_v7, %v1188_v8 }
 0x88e   : > { %v1190_v11 = vmul.f32 %v1189_v10, %v1189_v10 }
 0x890   : > { %1191 = vadd.xlane.f32.xlu1 %v1190_v11 }
 0x919   : > { %v1192_v25 = vpop.xlane.xlu1 %1191 }
 0x91a   : > { %v1193_v26 = vmul.f32 0.03125, %v1192_v25 }
 0x91c   : > { %v1194_v27 = vadd.f32 1e-05, %v1193_v26 }
 0x91e   : > { %2004 = vrsqrt.f32 %v1194_v27 }
 0x92b   : > { %v2005_v28 = vpop.eup %2004 }
 0x92c   : > { %v1196_v30 = vmul.f32 %v2005_v28, %v1189_v10 }
 0x92e   : > { %v1203_v31 = vmul.f32 %v1649_v29, %v1196_v30 }
 0x930   : > { %v1210_v32 = vadd.f32 %v1650_v15, %v1203_v31 }
 0x932   : > { %v1211_v33 = vpack.c.bf16 %v1210_v32, %v1210_v32 }
 0x934   : > { %1814 = vmatmul.mubr.bf16.vlgmr.msra.gmra.mxu1 %v1211_v33 }
 0x9f4   : > { %v1317_v37 = vpop.f32.mrf.mxu1 }
 0x9f5   : > { %v1318_v38 = vadd.f32 %v1651_v36, %v1317_v37 }
 0x9f6   : > { %v1815_v39 = vpop.f32.mrf.mxu1 }
 0x9f7   : > { %v1323_v40 = vmax.f32 %v1318_v38, 0.0 }
 0x9f8   : > { %v1320_v41 = vpop.f32.mrf.mxu1 }
 0x9f9   : > { %v1324_v42 = vpack.c.bf16 %v1323_v40, %v1323_v40 }
 0x9fa   : > { %v1816_v43 = vpop.f32.mrf.mxu1 }
 0x9fb   : > { %1834 = vmatmul.mubr.bf16.vlgmr.msra.gmra.mxu0 %v1324_v42 }
 0xabb   : > { %v1430_v45 = vpop.f32.mrf.mxu0 }
 0xabc   : > { %v1431_v0 = vadd.f32 %v1660_v44, %v1430_v45 }
 0xabd   : > { %v1835_v46 = vpop.f32.mrf.mxu0 }
 0xabe   : > { %v1436_v47 = vadd.f32 %v1431_v0, %v1210_v32 }
 0xabf   : > { %v1433_v48 = vpop.f32.mrf.mxu0 }
 0xac0   : > { %1439 = vadd.xlane.f32.xlu0 %v1436_v47 }
 0xac1   : > { %v1836_v50 = vpop.f32.mrf.mxu0 }
 0xb49   : > { %v1440_v51 = vpop.xlane.xlu0 %1439 }
 0xb4a   : > { %v1441_v52 = vmul.f32 0.03125, %v1440_v51 }
 0xb4c   : > { %v1442_v53 = vsub.f32 %v1436_v47, %v1441_v52 }
 0xb4e   : > { %v1443_v54 = vmul.f32 %v2682_v7, %v1442_v53 }
 0xb50   : > { %v1444_v55 = vmul.f32 %v1443_v54, %v1443_v54 }
 0xb52   : > { %1445 = vadd.xlane.f32.xlu0 %v1444_v55 }
 0xbdb   : > { %v1446_v56 = vpop.xlane.xlu0 %1445 }
 0xbdc   : > { %v1447_v57 = vmul.f32 0.03125, %v1446_v56 }
 0xbde   : > { %v1448_v58 = vadd.f32 1e-05, %v1447_v57 }
 0xbe0   : > { %2006 = vrsqrt.f32 %v1448_v58 }
 0xbed   : > { %v2007_v59 = vpop.eup %2006 }
 0xbee   : > { %v1450_v61 = vmul.f32 %v2007_v59, %v1443_v54 }
 0xbf0   : > { %v1457_v63 = vmul.f32 %v1669_v60, %v1450_v61 }
 0xbf2   : > { %v1464_v1 = vadd.f32 %v1670_v62, %v1457_v63 }
 0xbf4   : > { %1465 = vst [vmem:[%s532_s3] sm:$0xff] %v1464_v1 }
 0xbf5   : > { %2205 = shalt.err (!%p2202_p6)
}
 0xbf6   : > { %s2206_s4 = scalar_lea.hbm %s1478_s15, 128  ;;  %s2210_s23 = scalar_lea.hbm %s2799_s13, 256 }
 0xbf7   : > { %p2207_p5 = scmp.ne.s32.totalorder %s1478_s15, %s2206_s4  ;;  %p2211_p1 = scmp.lt.s32.totalorder %s1478_s15, %s2799_s13 }
 0xbf8   : > { %p2212_p9 = scmp.lt.s32.totalorder %s2210_s23, %s2206_s4 }
 0xbf9   : > { %p2208_p2 = pnand %p2207_p5, %p2836_p12 }
 0xbfa   : > { %p2213_p10 = por %p2212_p9, %p2211_p1 }
 0xbfb   : > { %p2209_p8 = pneg %p2208_p2 }
 0xbfd   : > { %p2214_p11 = pnand %p2213_p10, %p2209_p8 }
 0xbff   : > { %2217 = shalt.err (!%p2214_p11)
}
 0xc00   : > { %1863 = dma.vmem_to_hbm [thread:$0]  (%p2836_p12), %s1481_s5, 128, %s1478_s15, %s1467_s2  }
 0xc01 PF: > { %s1492_s24 = sand.u32 1, %s2256_s25   ;;  %p2837_p13 = scmp.ne.s32.totalorder %s2826_s16, 0 }
 0xc02   : > { %p2838_p0 = scmp.ge.s32.totalorder %s2268_s28, 2  ;;  %s1493_s3 = scalar_lea.sflag [#allocation4], %s1492_s24 }
 0xc04   : > { %p1889_p4 = pnand %p2838_p0, %p2837_p13 }
 0xc06   : > { %p1890_p3 = pneg %p1889_p4 }
 0xc08   : > { %2251 = dma.done.wait (%p1890_p3), %s1493_s3, 128  }
 0xc09   : > { %2253 = vsyncadd (%p1890_p3), %s1493_s3, 4294967168  ;;  %s2839_s6 = sld [smem:[#allocation20_spill]]  ;;  %p29_p7 = scmp.ge.s32.totalorder %s2474_s20, 4  }
 0xc0a   : > { %s2840_s27 = sld [smem:[#allocation21_spill]]  ;;  %s2841_s25 = smov %s2260_s26 }
 0xc0b   : > { %s2843_s28 = smov %s2474_s20  ;;  %31 = sbr.rel (!%p29_p7) target bundleno = 15 (0xf), region = 141 }
 0xc0f   : > { %s2842_s26 = smov %s2839_s6 }
 0xc10   :  { %1498 = vsyncpa [#allocation3], 1 }
 0xc11   :  { %1500 = vsyncpa [#allocation3 + $0x1], 1 }
 0xc12   :  { %1501 = vsyncpa [#allocation6], 1 }
 0xc13   :  { %1502 = vsyncpa [#allocation9], 1 }
 0xc14   :  { %1503 = vsyncpa [#allocation12], 1 }
 0xc15   :  { %1504 = vsyncpa [#allocation4], 1 }
 0xc16   :  { %1506 = vsyncpa [#allocation4 + $0x1], 1 }

</bundles_post_ra>
